<compile_context>
chip_gen: v7x
topology: tpu7x:2x2x1
jax: 0.10.0
libtpu: 0.0.40
codegen_flags: <defaults>
</compile_context>

<pallas_src>
import jax
import jax.numpy as jnp
from jax.experimental import pallas as pl
from jax.experimental.pallas import tpu as pltpu


def snli_kernel(x_ref, w1_ref, b1_ref, w2_ref, b2_ref, o_ref):
    # First linear layer on the MXU, f32 accumulation.
    h = jnp.dot(x_ref[...], w1_ref[...], preferred_element_type=jnp.float32)
    h = h + b1_ref[...]

    # dropout(p=0.0) is the identity; batch_norm disabled (use_bn=False).

    # Sigmoid: exp + approx reciprocal both route to the EUP (VPU stays free).
    h = pl.reciprocal(1.0 + jnp.exp(-h), approx=True)

    # Output linear layer (tiny) + numerically stable softmax over classes.
    logits = jnp.dot(h, w2_ref[...], preferred_element_type=jnp.float32)
    logits = logits + b2_ref[...]
    m = jnp.max(logits, axis=-1, keepdims=True)
    e = jnp.exp(logits - m)
    # Exact normalization (O(B*3), free relative to the input stream) so the
    # probabilities sum to 1; the approx reciprocal is only used for sigmoid.
    probs = e / jnp.sum(e, axis=-1, keepdims=True)

    o_ref[...] = probs.astype(o_ref.dtype)


def _round_up(x, m):
    return ((x + m - 1) // m) * m


def snli_classifier(inp, w1, b1, w2, b2, *, block_b=1024):
    """inp: (B, D) f32; w1: (D, H); b1: (1, H); w2: (H, 3); b2: (1, 3).

    block_b: batch tile size (rounded up to a multiple of 8).
      v7x : 1024-2048 (64 MiB VMEM/TC; keep the input double buffer <~24 MiB)
      v6e : 512-1024 (near roofline already at 512)
      v5e : 512-1024 (vmem_limit_bytes below raises the 16 MiB scoped default)
    """
    B, D = inp.shape
    H = w1.shape[1]
    C = w2.shape[1]

    tb = min(_round_up(block_b, 8), _round_up(B, 8))
    grid = (pl.cdiv(B, tb),)

    itemsize = jnp.dtype(inp.dtype).itemsize
    # Double-buffered input tile + (conservatively double-buffered) weights +
    # lane-padded output tile, 1.5x headroom; clamp to 64 MiB (v7x VMEM/TC).
    in_buf = 2 * tb * D * itemsize
    w_buf = 2 * (D * H + H + H * C + C) * 4
    out_buf = 2 * tb * max(C, 128) * 4
    vmem_bytes = int(1.5 * (in_buf + w_buf + out_buf)) + (2 << 20)
    vmem_bytes = min(max(vmem_bytes, 8 << 20), 64 << 20)

    cost = pl.CostEstimate(
        flops=2 * B * D * H + 2 * B * H * C,
        transcendentals=B * H + 2 * B * C,
        bytes_accessed=B * D * itemsize + (D * H + H + H * C + C) * 4 + B * C * 4,
    )

    def make_call(weights_single_buffered):
        wkw = (dict(pipeline_mode=pl.Buffered(1))
               if weights_single_buffered else {})
        return pl.pallas_call(
            snli_kernel,
            out_shape=jax.ShapeDtypeStruct((B, C), jnp.float32),
            grid=grid,
            in_specs=[
                # Streamed input: one (tb, D) tile per grid step, double-
                # buffered; partial last block is masked by Pallas (no pad).
                pl.BlockSpec((tb, D), lambda i: (i, 0)),
                # Weights/biases: constant index_map -> resident in VMEM.
                pl.BlockSpec((D, H), lambda i: (0, 0), **wkw),
                pl.BlockSpec((1, H), lambda i: (0, 0), **wkw),
                pl.BlockSpec((H, C), lambda i: (0, 0), **wkw),
                pl.BlockSpec((1, C), lambda i: (0, 0), **wkw),
            ],
            out_specs=pl.BlockSpec((tb, C), lambda i: (i, 0)),
            compiler_params=pltpu.CompilerParams(
                # Independent batch tiles: shard across TensorCores (2x v7x).
                dimension_semantics=("parallel",),
                vmem_limit_bytes=vmem_bytes,
            ),
            cost_estimate=cost,
        )

    try:
        probs = make_call(True)(inp, w1, b1, w2, b2)
    except Exception:
        # Fallback if this JAX build rejects pipeline_mode=pl.Buffered(1)
        # on the resident weight specs.
        probs = make_call(False)(inp, w1, b1, w2, b2)

    # .view(-1, 1) from the PyTorch forward — pure glue, outside the kernel.
    return probs.reshape(-1, 1)


def snli_reference(inp, w1, b1, w2, b2):
    h = inp @ w1 + b1
    h = jax.nn.sigmoid(h)
    logits = h @ w2 + b2
    probs = jax.nn.softmax(logits, axis=-1)
    return probs.reshape(-1, 1)


if __name__ == "__main__":
    # Small shapes consistent with the module (input_dim -> hidden_dim -> 3).
    # batch=300 with block_b=128 gives a 3-step grid whose last block is
    # partial, exercising the padding-free boundary-masking path.
    batch, input_dim, hidden_dim, n_classes = 300, 256, 32, 3

    key = jax.random.PRNGKey(0)
    k_x, k_w1, k_b1, k_w2, k_b2 = jax.random.split(key, 5)

    inp = jax.random.normal(k_x, (batch, input_dim), dtype=jnp.float32)
    # Deterministic synthetic parameter init (uniform, Linear-like scaling).
    w1 = jax.random.uniform(k_w1, (input_dim, hidden_dim), jnp.float32,
                            -1.0, 1.0) / jnp.sqrt(jnp.float32(input_dim))
    b1 = jax.random.uniform(k_b1, (1, hidden_dim), jnp.float32,
                            -1.0, 1.0) / jnp.sqrt(jnp.float32(input_dim))
    w2 = jax.random.uniform(k_w2, (hidden_dim, n_classes), jnp.float32,
                            -1.0, 1.0) / jnp.sqrt(jnp.float32(hidden_dim))
    b2 = jax.random.uniform(k_b2, (1, n_classes), jnp.float32,
                            -1.0, 1.0) / jnp.sqrt(jnp.float32(hidden_dim))

    out = snli_classifier(inp, w1, b1, w2, b2, block_b=128)
    out = jax.block_until_ready(out)

    ref = snli_reference(inp, w1, b1, w2, b2)
    assert out.shape == (batch * n_classes, 1), out.shape
    # Tolerance covers the MXU's default (bf16-class) f32 matmul precision and
    # the approx EUP reciprocal used inside the sigmoid.
    assert jnp.allclose(out, ref, atol=2e-2, rtol=2e-2), "mismatch vs reference"

    print("KERNEL_OK")
</pallas_src>

<mosaic_0001>
module attributes {stable_mosaic.version = 11 : i64} {
  func.func @snli_kernel(%arg0: i32, %arg1: memref<128x256xf32, #tpu.memory_space<vmem>>, %arg2: memref<256x32xf32, #tpu.memory_space<vmem>>, %arg3: memref<1x32xf32, #tpu.memory_space<vmem>>, %arg4: memref<32x3xf32, #tpu.memory_space<vmem>>, %arg5: memref<1x3xf32, #tpu.memory_space<vmem>>, %arg6: memref<128x3xf32, #tpu.memory_space<vmem>>) attributes {dimension_semantics = [#tpu.dimension_semantics<parallel>], iteration_bounds = array<i64: 3>, scalar_prefetch = 0 : i64, scratch_operands = 0 : i64, tpu.core_type = #tpu.core_type<tc>, window_params = [{transform_indices = @transform_0, window_bounds = array<i64: 128, 256>}, {pipeline_mode = #tpu.pipeline_mode<synchronous>, transform_indices = @transform_1, window_bounds = array<i64: 256, 32>}, {pipeline_mode = #tpu.pipeline_mode<synchronous>, transform_indices = @transform_2, window_bounds = array<i64: 1, 32>}, {pipeline_mode = #tpu.pipeline_mode<synchronous>, transform_indices = @transform_3, window_bounds = array<i64: 32, 3>}, {pipeline_mode = #tpu.pipeline_mode<synchronous>, transform_indices = @transform_4, window_bounds = array<i64: 1, 3>}, {transform_indices = @transform_5, window_bounds = array<i64: 128, 3>}]} {
    %c0 = arith.constant 0 : index
    %c0_0 = arith.constant 0 : index
    %0 = vector.load %arg1[%c0, %c0_0] : memref<128x256xf32, #tpu.memory_space<vmem>>, vector<128x256xf32>
    %c0_1 = arith.constant 0 : index
    %c0_2 = arith.constant 0 : index
    %1 = vector.load %arg2[%c0_1, %c0_2] : memref<256x32xf32, #tpu.memory_space<vmem>>, vector<256x32xf32>
    %cst = arith.constant dense<0.000000e+00> : vector<128x32xf32>
    %2 = tpu.matmul %0, %1, %cst {dimension_numbers = #tpu.dot_dimension_numbers<[1], [0], [0], [1], [0, 0, 1, 1], [], []>} : vector<128x256xf32>, vector<256x32xf32>, vector<128x32xf32> -> vector<128x32xf32>
    %c0_3 = arith.constant 0 : index
    %c0_4 = arith.constant 0 : index
    %3 = vector.load %arg3[%c0_3, %c0_4] : memref<1x32xf32, #tpu.memory_space<vmem>>, vector<1x32xf32>
    %4 = vector.broadcast %3 : vector<1x32xf32> to vector<128x32xf32>
    %5 = arith.addf %2, %4 : vector<128x32xf32>
    %cst_5 = arith.constant 0.000000e+00 : f32
    %6 = vector.broadcast %cst_5 : f32 to vector<128x32xf32>
    %7 = arith.subf %6, %5 : vector<128x32xf32>
    %8 = math.exp %7 : vector<128x32xf32>
    %cst_6 = arith.constant 1.000000e+00 : f32
    %9 = vector.broadcast %cst_6 : f32 to vector<128x32xf32>
    %10 = arith.addf %9, %8 : vector<128x32xf32>
    %11 = tpu.reciprocal %10 {approx = true} : vector<128x32xf32> -> vector<128x32xf32>
    %c0_7 = arith.constant 0 : index
    %c0_8 = arith.constant 0 : index
    %12 = vector.load %arg4[%c0_7, %c0_8] : memref<32x3xf32, #tpu.memory_space<vmem>>, vector<32x3xf32>
    %cst_9 = arith.constant dense<0.000000e+00> : vector<128x3xf32>
    %13 = tpu.matmul %11, %12, %cst_9 {dimension_numbers = #tpu.dot_dimension_numbers<[1], [0], [0], [1], [0, 0, 1, 1], [], []>} : vector<128x32xf32>, vector<32x3xf32>, vector<128x3xf32> -> vector<128x3xf32>
    %c0_10 = arith.constant 0 : index
    %c0_11 = arith.constant 0 : index
    %14 = vector.load %arg5[%c0_10, %c0_11] : memref<1x3xf32, #tpu.memory_space<vmem>>, vector<1x3xf32>
    %15 = vector.broadcast %14 : vector<1x3xf32> to vector<128x3xf32>
    %16 = arith.addf %13, %15 : vector<128x3xf32>
    %cst_12 = arith.constant dense<0xFF800000> : vector<128xf32>
    %17 = vector.multi_reduction <maximumf>, %16, %cst_12 [1] : vector<128x3xf32> to vector<128xf32>
    %18 = vector.shape_cast %17 : vector<128xf32> to vector<128x1xf32>
    %19 = vector.broadcast %18 : vector<128x1xf32> to vector<128x3xf32>
    %20 = arith.subf %16, %19 : vector<128x3xf32>
    %21 = math.exp %20 : vector<128x3xf32>
    %cst_13 = arith.constant dense<0.000000e+00> : vector<128xf32>
    %22 = vector.multi_reduction <add>, %21, %cst_13 [1] : vector<128x3xf32> to vector<128xf32>
    %23 = vector.shape_cast %22 : vector<128xf32> to vector<128x1xf32>
    %24 = vector.broadcast %23 : vector<128x1xf32> to vector<128x3xf32>
    %25 = arith.divf %21, %24 : vector<128x3xf32>
    %c0_14 = arith.constant 0 : index
    %c0_15 = arith.constant 0 : index
    %26 = vector.load %arg6[%c0_14, %c0_15] : memref<128x3xf32, #tpu.memory_space<vmem>>, vector<128x3xf32>
    tpu.vector_store %arg6[%c0_14, %c0_15], %25 {strides = array<i32>} : memref<128x3xf32, #tpu.memory_space<vmem>>, vector<128x3xf32>,
    return
  }
  func.func @transform_0(%arg0: i32) -> (i32, i32) {
    %c0_i32 = arith.constant 0 : i32
    %c0_i32_0 = arith.constant 0 : i32
    return %arg0, %c0_i32 : i32, i32
  }
  func.func @transform_1(%arg0: i32) -> (i32, i32) {
    %c0_i32 = arith.constant 0 : i32
    %c0_i32_0 = arith.constant 0 : i32
    %c0_i32_1 = arith.constant 0 : i32
    return %c0_i32, %c0_i32_0 : i32, i32
  }
  func.func @transform_2(%arg0: i32) -> (i32, i32) {
    %c0_i32 = arith.constant 0 : i32
    %c0_i32_0 = arith.constant 0 : i32
    %c0_i32_1 = arith.constant 0 : i32
    return %c0_i32, %c0_i32_0 : i32, i32
  }
  func.func @transform_3(%arg0: i32) -> (i32, i32) {
    %c0_i32 = arith.constant 0 : i32
    %c0_i32_0 = arith.constant 0 : i32
    %c0_i32_1 = arith.constant 0 : i32
    return %c0_i32, %c0_i32_0 : i32, i32
  }
  func.func @transform_4(%arg0: i32) -> (i32, i32) {
    %c0_i32 = arith.constant 0 : i32
    %c0_i32_0 = arith.constant 0 : i32
    %c0_i32_1 = arith.constant 0 : i32
    return %c0_i32, %c0_i32_0 : i32, i32
  }
  func.func @transform_5(%arg0: i32) -> (i32, i32) {
    %c0_i32 = arith.constant 0 : i32
    %c0_i32_0 = arith.constant 0 : i32
    return %arg0, %c0_i32 : i32, i32
  }
}

module attributes {stable_mosaic.version = 11 : i64} {
  func.func @snli_kernel(%arg0: i32, %arg1: memref<128x256xf32, #tpu.memory_space<vmem>>, %arg2: memref<256x32xf32, #tpu.memory_space<vmem>>, %arg3: memref<1x32xf32, #tpu.memory_space<vmem>>, %arg4: memref<32x3xf32, #tpu.memory_space<vmem>>, %arg5: memref<1x3xf32, #tpu.memory_space<vmem>>, %arg6: memref<128x3xf32, #tpu.memory_space<vmem>>) attributes {dimension_semantics = [#tpu.dimension_semantics<parallel>], iteration_bounds = array<i64: 3>, scalar_prefetch = 0 : i64, scratch_operands = 0 : i64, tpu.core_type = #tpu.core_type<tc>, window_params = [{transform_indices = @transform_0, window_bounds = array<i64: 128, 256>}, {pipeline_mode = #tpu.pipeline_mode<synchronous>, transform_indices = @transform_1, window_bounds = array<i64: 256, 32>}, {pipeline_mode = #tpu.pipeline_mode<synchronous>, transform_indices = @transform_2, window_bounds = array<i64: 1, 32>}, {pipeline_mode = #tpu.pipeline_mode<synchronous>, transform_indices = @transform_3, window_bounds = array<i64: 32, 3>}, {pipeline_mode = #tpu.pipeline_mode<synchronous>, transform_indices = @transform_4, window_bounds = array<i64: 1, 3>}, {transform_indices = @transform_5, window_bounds = array<i64: 128, 3>}]} {
    %c0 = arith.constant 0 : index
    %c0_0 = arith.constant 0 : index
    %0 = vector.load %arg1[%c0, %c0_0] : memref<128x256xf32, #tpu.memory_space<vmem>>, vector<128x256xf32>
    %c0_1 = arith.constant 0 : index
    %c0_2 = arith.constant 0 : index
    %1 = vector.load %arg2[%c0_1, %c0_2] : memref<256x32xf32, #tpu.memory_space<vmem>>, vector<256x32xf32>
    %cst = arith.constant dense<0.000000e+00> : vector<128x32xf32>
    %2 = tpu.matmul %0, %1, %cst {dimension_numbers = #tpu.dot_dimension_numbers<[1], [0], [0], [1], [0, 0, 1, 1], [], []>} : vector<128x256xf32>, vector<256x32xf32>, vector<128x32xf32> -> vector<128x32xf32>
    %c0_3 = arith.constant 0 : index
    %c0_4 = arith.constant 0 : index
    %3 = vector.load %arg3[%c0_3, %c0_4] : memref<1x32xf32, #tpu.memory_space<vmem>>, vector<1x32xf32>
    %4 = vector.broadcast %3 : vector<1x32xf32> to vector<128x32xf32>
    %5 = arith.addf %2, %4 : vector<128x32xf32>
    %cst_5 = arith.constant 0.000000e+00 : f32
    %6 = vector.broadcast %cst_5 : f32 to vector<128x32xf32>
    %7 = arith.subf %6, %5 : vector<128x32xf32>
    %8 = math.exp %7 : vector<128x32xf32>
    %cst_6 = arith.constant 1.000000e+00 : f32
    %9 = vector.broadcast %cst_6 : f32 to vector<128x32xf32>
    %10 = arith.addf %9, %8 : vector<128x32xf32>
    %11 = tpu.reciprocal %10 {approx = true} : vector<128x32xf32> -> vector<128x32xf32>
    %c0_7 = arith.constant 0 : index
    %c0_8 = arith.constant 0 : index
    %12 = vector.load %arg4[%c0_7, %c0_8] : memref<32x3xf32, #tpu.memory_space<vmem>>, vector<32x3xf32>
    %cst_9 = arith.constant dense<0.000000e+00> : vector<128x3xf32>
    %13 = tpu.matmul %11, %12, %cst_9 {dimension_numbers = #tpu.dot_dimension_numbers<[1], [0], [0], [1], [0, 0, 1, 1], [], []>} : vector<128x32xf32>, vector<32x3xf32>, vector<128x3xf32> -> vector<128x3xf32>
    %c0_10 = arith.constant 0 : index
    %c0_11 = arith.constant 0 : index
    %14 = vector.load %arg5[%c0_10, %c0_11] : memref<1x3xf32, #tpu.memory_space<vmem>>, vector<1x3xf32>
    %15 = vector.broadcast %14 : vector<1x3xf32> to vector<128x3xf32>
    %16 = arith.addf %13, %15 : vector<128x3xf32>
    %cst_12 = arith.constant dense<0xFF800000> : vector<128xf32>
    %17 = vector.multi_reduction <maximumf>, %16, %cst_12 [1] : vector<128x3xf32> to vector<128xf32>
    %18 = vector.shape_cast %17 : vector<128xf32> to vector<128x1xf32>
    %19 = vector.broadcast %18 : vector<128x1xf32> to vector<128x3xf32>
    %20 = arith.subf %16, %19 : vector<128x3xf32>
    %21 = math.exp %20 : vector<128x3xf32>
    %cst_13 = arith.constant dense<0.000000e+00> : vector<128xf32>
    %22 = vector.multi_reduction <add>, %21, %cst_13 [1] : vector<128x3xf32> to vector<128xf32>
    %23 = vector.shape_cast %22 : vector<128xf32> to vector<128x1xf32>
    %24 = vector.broadcast %23 : vector<128x1xf32> to vector<128x3xf32>
    %25 = arith.divf %21, %24 : vector<128x3xf32>
    %c0_14 = arith.constant 0 : index
    %c0_15 = arith.constant 0 : index
    %26 = vector.load %arg6[%c0_14, %c0_15] : memref<128x3xf32, #tpu.memory_space<vmem>>, vector<128x3xf32>
    tpu.vector_store %arg6[%c0_14, %c0_15], %25 {strides = array<i32>} : memref<128x3xf32, #tpu.memory_space<vmem>>, vector<128x3xf32>,
    return
  }
  func.func @transform_0(%arg0: i32) -> (i32, i32) {
    %c0_i32 = arith.constant 0 : i32
    %c0_i32_0 = arith.constant 0 : i32
    return %arg0, %c0_i32 : i32, i32
  }
  func.func @transform_1(%arg0: i32) -> (i32, i32) {
    %c0_i32 = arith.constant 0 : i32
    %c0_i32_0 = arith.constant 0 : i32
    %c0_i32_1 = arith.constant 0 : i32
    return %c0_i32, %c0_i32_0 : i32, i32
  }
  func.func @transform_2(%arg0: i32) -> (i32, i32) {
    %c0_i32 = arith.constant 0 : i32
    %c0_i32_0 = arith.constant 0 : i32
    %c0_i32_1 = arith.constant 0 : i32
    return %c0_i32, %c0_i32_0 : i32, i32
  }
  func.func @transform_3(%arg0: i32) -> (i32, i32) {
    %c0_i32 = arith.constant 0 : i32
    %c0_i32_0 = arith.constant 0 : i32
    %c0_i32_1 = arith.constant 0 : i32
    return %c0_i32, %c0_i32_0 : i32, i32
  }
  func.func @transform_4(%arg0: i32) -> (i32, i32) {
    %c0_i32 = arith.constant 0 : i32
    %c0_i32_0 = arith.constant 0 : i32
    %c0_i32_1 = arith.constant 0 : i32
    return %c0_i32, %c0_i32_0 : i32, i32
  }
  func.func @transform_5(%arg0: i32) -> (i32, i32) {
    %c0_i32 = arith.constant 0 : i32
    %c0_i32_0 = arith.constant 0 : i32
    return %arg0, %c0_i32 : i32, i32
  }
}

</mosaic_0001>

<bundles_post_ra>
// kernel: tpu_custom_call.1
= control target key start
LH: loop header
LB: loop body
LE: loop exit
PB: predicated region body
PF: predicated region fallthrough
CT: control target
= control target key end

     0   :  { %10 = vsyncpa [#allocation3], 0  ;;  %s2460_s0 = inlined_call_operand.hbm [shape: f32[300,256], index: 0, kind: input, shape index: {}]   ;;  %s2461_s1 = inlined_call_operand.vmem [shape: f32[256,32], index: 1, kind: input, shape index: {}]   ;;  %s2462_s2 = inlined_call_operand.vmem [shape: f32[1,32], index: 2, kind: input, shape index: {}]   ;;  %s2463_s3 = inlined_call_operand.vmem [shape: f32[32,3], index: 3, kind: input, shape index: {}]   ;;  %s2464_s4 = inlined_call_operand.vmem [shape: f32[1,3], index: 4, kind: input, shape index: {}]   ;;  %s2465_s5 = inlined_call_operand.vmem [shape: f32[300,3], index: 5, kind: output, shape index: {}]  }
   0x1   :  { %12 = vsyncpa [#allocation3 + $0x1], 0  ;;  %s1870_s18 = smov 0   ;;  %s1872_s19 = smov 0  }
   0x2   :  { %s1874_s20 = smov 0   ;;  %s1876_s21 = smov 0  }
   0x3 LB: > { %s1889_s22 = sadd.s32 4294967295, %s1803_s21   ;;  %s1892_s23 = sadd.s32 1, %s1803_s21   ;;  %s1803_s21 = sphi %s1876_s21, %s2474_s21   ;;  %s1799_s20 = sphi %s1874_s20, %s2473_s20   ;;  %s1795_s19 = sphi %s1872_s19, %s2472_s19   ;;  %s1791_s18 = sphi %s1870_s18, %s2471_s18  }
   0x4   : > { %s22_s24 = ssub.s32 %s1803_s21, %s1892_s23  ;;  %s25_s25 = sadd.s32 1, %s1799_s20 }
   0x5   : > { %p23_p0 = scmp.eq.s32.totalorder %s22_s24, 0  ;;  %p32_p1 = scmp.ne.s32.totalorder %s1799_s20, %s1795_s19 }
   0x6   : > { %p33_p2 = scmp.eq.s32.totalorder %s1803_s21, 0  ;;  %p38_p3 = scmp.ne.s32.totalorder %s1795_s19, %s1791_s18 }
   0x7   : > { %s1902_s26 = scalar_select %p23_p0, %s1799_s20, %s25_s25  }
   0x8   : > { %p34_p4 = por %p33_p2, %p32_p1  ;;  %p39_p5 = scmp.eq.s32.totalorder %s1889_s22, 0 }
   0x9   : > { %p146_p6 = scmp.eq.s32.totalorder %s1889_s22, 2  ;;  %p1240_p9 = scmp.ge.s32.totalorder %s1803_s21, 3 }
   0xa   : > { %p1906_p7 = por %p39_p5, %p38_p3 }
   0xb   : > { %p1910_p8 = por %p146_p6, %p32_p1  ;;  %180 = sbr.rel (%p1240_p9) target bundleno = 53 (0x35), region = 32 }
  0x12   : > { %183 = sbr.rel (!%p34_p4) target bundleno = 53 (0x35), region = 36  ;;  %s184_s29 = sand.u32 (%p34_p4), 1, %s1799_s20  }
  0x13   : > { %s1242_s30 = sshll.u32 (%p34_p4), %s1803_s21, 4  ;;  %s1241_s6 = sshll.u32 (%p34_p4), %s184_s29, 8 }
  0x14   : > { %s190_s7 = ssub.s32 (%p34_p4), 38, %s1242_s30  ;;  %s1920_s10 = scalar_lea.sflag (%p34_p4), [#allocation3], %s184_s29 }
  0x15   : > { %p191_p10 = scmp.lt.s32.totalorder (%p34_p4), %s190_s7, 16  ;;  %s188_s11 = scalar_lea.vmem (%p34_p4), [#allocation2], %s1241_s6 }
  0x19   : > { %s2476_s7 = smov (!%p191_p10, %s190_s7), 16 }
  0x1a   : > { %s1917_s8 = sshll.u32 %s2476_s7, 8 }
  0x1b   : > { %s196_s9 = ssub.s32 4096, %s1917_s8 }
  0x1c   : > { %197 = vsyncadd %s1920_s10, %s196_s9  ;;  %p1245_p11 = scmp.ne.s32.totalorder %s1917_s8, 0  ;;  %s1290_s12 = sshll.u32 %s1803_s21, 12 }
  0x1d   : > { %s1928_s15 = scalar_lea.hbm %s2460_s0, %s1290_s12  ;;  %s203_s16 = sshll.u32 %s188_s11, 4  ;;  %s1930_s16 = int_to_ptr.vmem [resolvable:$true] %s203_s16 }
  0x1e   : > { %s1709_s17 = scalar_lea.hbm %s1928_s15, %s1917_s8  ;;  %s1713_s25 = scalar_lea.hbm %s2460_s0, 9728 }
  0x1f   : > { %p1710_p12 = scmp.ne.s32.totalorder %s1928_s15, %s1709_s17  ;;  %p1714_p1 = scmp.lt.u32.totalorder %s1928_s15, %s2460_s0 }
  0x20   : > { %p1715_p2 = scmp.lt.u32.totalorder %s1713_s25, %s1709_s17  ;;  %p1717_p4 = scmp.lt.u32.totalorder %s1709_s17, %s1928_s15 }
  0x21   : > { %p1711_p13 = pnand %p1710_p12, %p1245_p11 }
  0x22   : > { %p1716_p3 = por %p1715_p2, %p1714_p1 }
  0x23   : > { %p1712_p0 = pneg %p1711_p13 }
  0x24   : > { %p1718_p5 = por %p1717_p4, %p1716_p3 }
  0x26   : > { %p1719_p6 = pnand %p1718_p5, %p1712_p0 }
  0x28   : > { %1722 = shalt.err (!%p1719_p6)
}
  0x29   : > { %s1723_s6 = scalar_lea.vmem %s1930_s16, %s1917_s8  ;;  %s1837_s7 = smov [#allocation2]  }
  0x2a   : > { %p1724_p9 = scmp.ne.s32.totalorder %s1930_s16, %s1723_s6  ;;  %s1727_s9 = sshll.u32 %s1837_s7, 4  ;;  %s1728_s9 = int_to_ptr.vmem [resolvable:$false] %s1727_s9 }
  0x2b   : > { %s1729_s11 = scalar_lea.vmem %s1728_s9, 8192  ;;  %p1730_p13 = scmp.lt.s32.totalorder %s1930_s16, %s1728_s9 }
  0x2c   : > { %p1725_p10 = pnand %p1724_p9, %p1245_p11  ;;  %p1731_p1 = scmp.lt.s32.totalorder %s1729_s11, %s1723_s6 }
  0x2e   : > { %p1726_p12 = pneg %p1725_p10  ;;  %p1732_p2 = por %p1731_p1, %p1730_p13 }
  0x30   : > { %p1733_p3 = pnand %p1732_p2, %p1726_p12 }
  0x32   : > { %1736 = shalt.err (!%p1733_p3)
}
  0x33   : > { %s1838_s12 = smov 256   ;;  %s1839_s13 = smov 16  }
  0x34   : > { %209 = dma.hbm_to_vmem [thread:$0]  (%p1245_p11), %s1928_s15, %s1917_s8, %s1930_s16, %s1920_s10, %s1838_s12, %s1838_s12, %s1839_s13  }
  0x35 PF: > { %p1250_p0 = scmp.ge.s32.totalorder %s1803_s21, 1  ;;  %p211_p4 = scmp.lt.s32.totalorder %s1803_s21, 4 }
  0x37   : > { %p212_p5 = pnand %p1250_p0, %p211_p4 }
  0x38   : > { %s1960_s14 = sand.u32 (!%p212_p5), 1, %s1795_s19  }
  0x39   : > { %215 = sbr.rel (%p212_p5) target bundleno = 976 (0x3d0), region = 40  ;;  %s1251_s17 = sshll.u32 (!%p212_p5), %s1960_s14, 8 }
  0x3a   : > { %s218_s18 = scalar_lea.sflag (!%p212_p5), [#allocation3], %s1960_s14  ;;  %s1964_s24 = scalar_lea.vmem (!%p212_p5), [#allocation2], %s1251_s17 }
  0x40   : > { %1786 = dma.done.wait (%p1906_p7), %s218_s18, 4096  }
  0x41   : > { %1788 = vsyncadd (%p1906_p7), %s218_s18, 4294963200  ;;  %v306_v0 = vld [vmem:[%s2461_s1 + $0x80] sm:$0xff]  ;;  %v307_v1 = vld [vmem:[%s2461_s1 + $0x88] sm:$0xff]  ;;  %vm565_vm0 = vcmask 261120   ;;  %vm759_vm1 = vcmask 23552   ;;  %s1252_s30 = sshll.u32 %s1960_s14, 7 }
  0x42   : > { %v290_v2 = vld [vmem:[%s2461_s1] sm:$0xff]  ;;  %v1426_v3 = vpack.c.bf16 %v307_v1, %v306_v0  ;;  %v291_v4 = vld [vmem:[%s2461_s1 + $0x8] sm:$0xff]  ;;  %v308_v5 = vld [vmem:[%s2461_s1 + $0x90] sm:$0xff]  ;;  %s2308_s6 = scalar_lea.vmem [#allocation4], %s1252_s30   ;;  %s1272_s14 = sshll.u32 (%p1910_p8), %s1889_s22, 4 }
  0x43   : > { %v309_v6 = vld [vmem:[%s2461_s1 + $0x98] sm:$0xff]  ;;  %v1428_v7 = vpack.c.bf16 %v291_v4, %v290_v2  ;;  %v292_v9 = vld [vmem:[%s2461_s1 + $0x10] sm:$0xff]  ;;  %v310_v11 = vld [vmem:[%s2461_s1 + $0xa0] sm:$0xff]  ;;  %s1291_s27 = sshll.u32 (%p1910_p8), %s1889_s22, 7  ;;  %s960_s7 = ssub.s32 (%p1910_p8), 38, %s1272_s14 }
  0x44   : > { %v1430_v8 = vpack.c.bf16 %v309_v6, %v308_v5  ;;  %v293_v10 = vld [vmem:[%s2461_s1 + $0x18] sm:$0xff]  ;;  %1427 = vmatprep.subr.bf16.mxu0 %v1426_v3  ;;  %v311_v12 = vld [vmem:[%s2461_s1 + $0xa8] sm:$0xff]  ;;  %1466 = vmatprep.subr.bf16.mxu1 %v1426_v3  ;;  %v294_v15 = vld [vmem:[%s2461_s1 + $0x20] sm:$0xff]  ;;  %s2364_s12 = scalar_lea.vmem (%p1910_p8), %s2465_s5, %s1291_s27   ;;  %p961_p7 = scmp.lt.s32.totalorder (%p1910_p8), %s960_s7, 16 }
  0x45   : > { %1429 = vmatpush3.bf16.msra.mxu0 %v1428_v7  ;;  %v1432_v13 = vpack.c.bf16 %v293_v10, %v292_v9  ;;  %1474 = vmatpush3.bf16.msra.mxu1 %v1428_v7  ;;  %v1434_v14 = vpack.c.bf16 %v311_v12, %v310_v11  ;;  %v295_v16 = vld [vmem:[%s2461_s1 + $0x28] sm:$0xff]  ;;  %v312_v17 = vld [vmem:[%s2461_s1 + $0xb0] sm:$0xff]  ;;  %v313_v18 = vld [vmem:[%s2461_s1 + $0xb8] sm:$0xff] }
  0x46   : > { %1431 = vmatprep.subr.bf16.mxu0 %v1430_v8  ;;  %1467 = vmatprep.subr.bf16.mxu1 %v1430_v8  ;;  %v1436_v19 = vpack.c.bf16 %v295_v16, %v294_v15  ;;  %v1438_v20 = vpack.c.bf16 %v313_v18, %v312_v17  ;;  %v296_v21 = vld [vmem:[%s2461_s1 + $0x30] sm:$0xff]  ;;  %v297_v22 = vld [vmem:[%s2461_s1 + $0x38] sm:$0xff]  ;;  %v314_v23 = vld [vmem:[%s2461_s1 + $0xc0] sm:$0xff] }
  0x47   : > { %v315_v24 = vld [vmem:[%s2461_s1 + $0xc8] sm:$0xff]  ;;  %v1440_v26 = vpack.c.bf16 %v297_v22, %v296_v21  ;;  %v298_v28 = vld [vmem:[%s2461_s1 + $0x40] sm:$0xff]  ;;  %v316_v30 = vld [vmem:[%s2461_s1 + $0xd0] sm:$0xff] }
  0x48   : > { %v259_v25 = vld [vmem:[%s1964_s24 + $0x8] sm:$0xff]  ;;  %v1442_v27 = vpack.c.bf16 %v315_v24, %v314_v23  ;;  %v317_v31 = vld [vmem:[%s2461_s1 + $0xd8] sm:$0xff]  ;;  %v300_v34 = vld [vmem:[%s2461_s1 + $0x50] sm:$0xff] }
  0x49   : > { %1433 = vmatpush3.bf16.msra.mxu0 %v1432_v13  ;;  %1475 = vmatpush3.bf16.msra.mxu1 %v1432_v13  ;;  %v299_v29 = vld [vmem:[%s2461_s1 + $0x48] sm:$0xff]  ;;  %v1446_v33 = vpack.c.bf16 %v317_v31, %v316_v30  ;;  %v301_v35 = vld [vmem:[%s2461_s1 + $0x58] sm:$0xff]  ;;  %v318_v37 = vld [vmem:[%s2461_s1 + $0xe0] sm:$0xff] }
  0x4a   : > { %1435 = vmatprep.subr.bf16.mxu0 %v1434_v14  ;;  %1468 = vmatprep.subr.bf16.mxu1 %v1434_v14  ;;  %v1444_v32 = vpack.c.bf16 %v299_v29, %v298_v28  ;;  %v283_v36 = vld [vmem:[%s1964_s24 + $0xc8] sm:$0xff]  ;;  %v1448_v39 = vpack.c.bf16 %v301_v35, %v300_v34  ;;  %v302_v41 = vld [vmem:[%s2461_s1 + $0x60] sm:$0xff]  ;;  %v320_v43 = vld [vmem:[%s2461_s1 + $0xf0] sm:$0xff] }
  0x4b   : > { %393 = vmatprep.mubr.f32.mxu0 %v259_v25  ;;  %v319_v38 = vld [vmem:[%s2461_s1 + $0xe8] sm:$0xff]  ;;  %453 = vmatprep.mubr.f32.mxu1 %v283_v36  ;;  %v321_v44 = vld [vmem:[%s2461_s1 + $0xf8] sm:$0xff]  ;;  %v304_v47 = vld [vmem:[%s2461_s1 + $0x70] sm:$0xff] }
  0x4c   : > { %v1450_v40 = vpack.c.bf16 %v319_v38, %v318_v37  ;;  %v303_v42 = vld [vmem:[%s2461_s1 + $0x68] sm:$0xff]  ;;  %v1454_v46 = vpack.c.bf16 %v321_v44, %v320_v43  ;;  %v305_v48 = vld [vmem:[%s2461_s1 + $0x78] sm:$0xff]  ;;  %v258_v50 = vld [vmem:[%s1964_s24] sm:$0xff] }
  0x4d   : > { %1437 = vmatpush3.bf16.msra.mxu0 %v1436_v19  ;;  %1476 = vmatpush3.bf16.msra.mxu1 %v1436_v19  ;;  %v1452_v45 = vpack.c.bf16 %v303_v42, %v302_v41  ;;  %v1456_v49 = vpack.c.bf16 %v305_v48, %v304_v47  ;;  %v282_v51 = vld [vmem:[%s1964_s24 + $0xc0] sm:$0xff]  ;;  %v261_v52 = vld [vmem:[%s1964_s24 + $0x18] sm:$0xff]  ;;  %v260_v54 = vld [vmem:[%s1964_s24 + $0x10] sm:$0xff] }
  0x4e   : > { %1439 = vmatprep.subr.bf16.mxu0 %v1438_v20  ;;  %1469 = vmatprep.subr.bf16.mxu1 %v1438_v20  ;;  %v285_v53 = vld [vmem:[%s1964_s24 + $0xd8] sm:$0xff]  ;;  %v284_v55 = vld [vmem:[%s1964_s24 + $0xd0] sm:$0xff]  ;;  %v263_v56 = vld [vmem:[%s1964_s24 + $0x28] sm:$0xff] }
  0x4f   : > { %v287_v57 = vld [vmem:[%s1964_s24 + $0xe8] sm:$0xff]  ;;  %v262_v58 = vld [vmem:[%s1964_s24 + $0x20] sm:$0xff]  ;;  %v265_v60 = vld [vmem:[%s1964_s24 + $0x38] sm:$0xff] }
  0x50   : > { %v286_v59 = vld [vmem:[%s1964_s24 + $0xe0] sm:$0xff]  ;;  %v289_v61 = vld [vmem:[%s1964_s24 + $0xf8] sm:$0xff]  ;;  %v264_v62 = vld [vmem:[%s1964_s24 + $0x30] sm:$0xff] }
  0x51   : > { %1441 = vmatpush3.bf16.msra.mxu0 %v1440_v26  ;;  %1477 = vmatpush3.bf16.msra.mxu1 %v1440_v26  ;;  %v288_v63 = vld [vmem:[%s1964_s24 + $0xf0] sm:$0xff]  ;;  %v267_v0 = vld [vmem:[%s1964_s24 + $0x48] sm:$0xff]  ;;  %v266_v1 = vld [vmem:[%s1964_s24 + $0x40] sm:$0xff] }
  0x52   : > { %1443 = vmatprep.subr.bf16.mxu0 %v1442_v27  ;;  %1470 = vmatprep.subr.bf16.mxu1 %v1442_v27  ;;  %v269_v2 = vld [vmem:[%s1964_s24 + $0x58] sm:$0xff]  ;;  %v268_v3 = vld [vmem:[%s1964_s24 + $0x50] sm:$0xff]  ;;  %v271_v4 = vld [vmem:[%s1964_s24 + $0x68] sm:$0xff] }
  0x53   : > { %v270_v5 = vld [vmem:[%s1964_s24 + $0x60] sm:$0xff]  ;;  %v273_v6 = vld [vmem:[%s1964_s24 + $0x78] sm:$0xff]  ;;  %v272_v7 = vld [vmem:[%s1964_s24 + $0x70] sm:$0xff] }
  0x54   : > { %v275_v8 = vld [vmem:[%s1964_s24 + $0x88] sm:$0xff]  ;;  %v274_v9 = vld [vmem:[%s1964_s24 + $0x80] sm:$0xff]  ;;  %v277_v10 = vld [vmem:[%s1964_s24 + $0x98] sm:$0xff] }
  0x55   : > { %1445 = vmatpush3.bf16.msra.mxu0 %v1444_v32  ;;  %1478 = vmatpush3.bf16.msra.mxu1 %v1444_v32  ;;  %v276_v11 = vld [vmem:[%s1964_s24 + $0x90] sm:$0xff]  ;;  %v279_v12 = vld [vmem:[%s1964_s24 + $0xa8] sm:$0xff]  ;;  %v278_v13 = vld [vmem:[%s1964_s24 + $0xa0] sm:$0xff] }
  0x56   : > { %1447 = vmatprep.subr.bf16.mxu0 %v1446_v33  ;;  %1471 = vmatprep.subr.bf16.mxu1 %v1446_v33  ;;  %v281_v14 = vld [vmem:[%s1964_s24 + $0xb8] sm:$0xff]  ;;  %v280_v15 = vld [vmem:[%s1964_s24 + $0xb0] sm:$0xff]  ;;  %v554_v16 = vld [vmem:[%s2463_s3] sm:$0xff] }
  0x57   : > { %v555_v17 = vld [vmem:[%s2463_s3 + $0x8] sm:$0xff]  ;;  %v556_v19 = vld [vmem:[%s2463_s3 + $0x10] sm:$0xff]  ;;  %v557_v20 = vld [vmem:[%s2463_s3 + $0x18] sm:$0xff] }
  0x58   : > { %v1458_v18 = vpack.c.bf16 %v555_v17, %v554_v16  ;;  %v1462_v21 = vpack.c.bf16 %v557_v20, %v556_v19  ;;  %v2113_v24 = vld [vmem:[%s2462_s2] ss:$0 sm:$0xff] }
  0x59   : > { %1449 = vmatpush3.bf16.msra.mxu0 %v1448_v39  ;;  %1479 = vmatpush3.bf16.msra.mxu1 %v1448_v39 }
  0x5a   : > { %1451 = vmatprep.subr.bf16.mxu0 %v1450_v40  ;;  %1472 = vmatprep.subr.bf16.mxu1 %v1450_v40 }
  0x5d   : > { %1453 = vmatpush3.bf16.msra.mxu0 %v1452_v45  ;;  %1480 = vmatpush3.bf16.msra.mxu1 %v1452_v45 }
  0x5e   : > { %1455 = vmatprep.subr.bf16.mxu0 %v1454_v46  ;;  %1473 = vmatprep.subr.bf16.mxu1 %v1454_v46 }
  0x61   : > { %1457 = vmatpush3.bf16.msra.mxu0 %v1456_v49  ;;  %1481 = vmatpush3.bf16.msra.mxu1 %v1456_v49 }
  0x62   : > { %1459 = vmatprep.subr.bf16.mxu1 %v1458_v18 }
  0x64   : > { %394 = vmatmul.mubr.f32.vlgmr.msra.gmra.mrb[0].mxu0 %v258_v50  ;;  %454 = vmatmul.mubr.f32.vlgmr.msra.gmra.mrb[0].mxu1 %v282_v51 }
  0x65   : > { %398 = vmatprep.mubr.f32.mxu0 %v261_v52  ;;  %458 = vmatprep.mubr.f32.mxu1 %v285_v53 }
  0x66   : > { %1461 = vmatpush3.bf16.msra.mxu1 %v1458_v18 }
  0x67   : > { %1463 = vmatprep.subr.bf16.mxu1 %v1462_v21 }
  0x68   : > { %399 = vmatmul.mubr.f32.gmra.mrb[2].mxu0 %v260_v54  ;;  %459 = vmatmul.mubr.f32.gmra.mrb[2].mxu1 %v284_v55 }
  0x69   : > { %403 = vmatprep.mubr.f32.mxu0 %v263_v56  ;;  %463 = vmatprep.mubr.f32.mxu1 %v287_v57 }
  0x6a   : > { %1465 = vmatpush3.bf16.msra.mxu1 %v1462_v21 }
  0x6c   : > { %404 = vmatmul.mubr.f32.gmra.mrb[4].mxu0 %v262_v58  ;;  %464 = vmatmul.mubr.f32.gmra.mrb[4].mxu1 %v286_v59 }
  0x6d   : > { %408 = vmatprep.mubr.f32.mxu0 %v265_v60  ;;  %468 = vmatprep.mubr.f32.mxu1 %v289_v61 }
  0x70   : > { %409 = vmatmul.mubr.f32.gmra.mrb[6].mxu0 %v264_v62  ;;  %469 = vmatmul.mubr.f32.gmra.mrb[6].mxu1 %v288_v63 }
  0x71   : > { %413 = vmatprep.mubr.f32.mxu0 %v267_v0 }
  0x74   : > { %414 = vmatmul.mubr.f32.gmra.mrb[8].mxu0 %v266_v1 }
  0x75   : > { %418 = vmatprep.mubr.f32.mxu0 %v269_v2 }
  0x78   : > { %419 = vmatmul.mubr.f32.gmra.mrb[10].mxu0 %v268_v3 }
  0x79   : > { %423 = vmatprep.mubr.f32.mxu0 %v271_v4 }
  0x7c   : > { %424 = vmatmul.mubr.f32.gmra.mrb[12].mxu0 %v270_v5 }
  0x7d   : > { %428 = vmatprep.mubr.f32.mxu0 %v273_v6 }
  0x80   : > { %429 = vmatmul.mubr.f32.gmra.mrb[14].mxu0 %v272_v7 }
  0x81   : > { %433 = vmatprep.mubr.f32.mxu0 %v275_v8 }
  0x84   : > { %434 = vmatmul.mubr.f32.gmra.mrb[16].mxu0 %v274_v9 }
  0x85   : > { %438 = vmatprep.mubr.f32.mxu0 %v277_v10 }
  0x88   : > { %439 = vmatmul.mubr.f32.gmra.mrb[18].mxu0 %v276_v11 }
  0x89   : > { %443 = vmatprep.mubr.f32.mxu0 %v279_v12 }
  0x8c   : > { %444 = vmatmul.mubr.f32.gmra.mrb[20].mxu0 %v278_v13 }
  0x8d   : > { %448 = vmatprep.mubr.f32.mxu0 %v281_v14 }
  0x90   : > { %449 = vmatmul.mubr.f32.gmra.mrb[22].mxu0 %v280_v15 }
 0x137   : > { %v1326_v22 = vpop.f32.mrb[0].mxu0  ;;  %v1362_v23 = vpop.f32.mrb[0].mxu1 }
 0x138   : > { %v1327_v25 = vpop.f32.mrb[1].mxu0  ;;  %v1363_v26 = vpop.f32.mrb[1].mxu1 }
 0x139   : > { %v1328_v27 = vadd.f32 %v1327_v25, %v1326_v22  ;;  %v2115_v28 = vadd.f32 %v1363_v26, %v1362_v23 }
 0x13b   : > { %v396_v29 = vadd.f32 %v1328_v27, %v2113_v24  ;;  %v1329_v30 = vpop.f32.mrb[2].mxu0  ;;  %v1365_v31 = vpop.f32.mrb[2].mxu1 }
 0x13c   : > { %v1330_v32 = vpop.f32.mrb[3].mxu0  ;;  %v1366_v33 = vpop.f32.mrb[3].mxu1 }
 0x13d   : > { %v474_v34 = vsub.f32 0.0, %v396_v29  ;;  %v1331_v35 = vadd.f32 %v1330_v32, %v1329_v30  ;;  %v2118_v36 = vadd.f32 %v1366_v33, %v1365_v31 }
 0x13f   : > { %v490_v37 = vmul.f32 1.442695, %v474_v34  ;;  %v401_v38 = vadd.f32 %v1331_v35, %v2113_v24  ;;  %v1332_v39 = vpop.f32.mrb[4].mxu0  ;;  %v1368_v40 = vpop.f32.mrb[4].mxu1 }
 0x140   : > { %v1333_v41 = vpop.f32.mrb[5].mxu0  ;;  %v1369_v42 = vpop.f32.mrb[5].mxu1 }
 0x141   : > { %1581 = vpow2.f32 %v490_v37  ;;  %v475_v43 = vsub.f32 0.0, %v401_v38  ;;  %v1334_v44 = vadd.f32 %v1333_v41, %v1332_v39  ;;  %v2121_v45 = vadd.f32 %v1369_v42, %v1368_v40 }
 0x142   : > { %v456_v40 = vadd.f32 %v2115_v28, %v2113_v24 }
 0x143   : > { %v492_v46 = vmul.f32 1.442695, %v475_v43  ;;  %v406_v47 = vadd.f32 %v1334_v44, %v2113_v24  ;;  %v1335_v48 = vpop.f32.mrb[6].mxu0  ;;  %v1371_v49 = vpop.f32.mrb[6].mxu1  ;;  %v466_v28 = vadd.f32 %v2121_v45, %v2113_v24 }
 0x144   : > { %v1336_v50 = vpop.f32.mrb[7].mxu0  ;;  %v1372_v51 = vpop.f32.mrb[7].mxu1 }
 0x145   : > { %1583 = vpow2.f32 %v492_v46  ;;  %v476_v52 = vsub.f32 0.0, %v406_v47  ;;  %v1337_v53 = vadd.f32 %v1336_v50, %v1335_v48  ;;  %v2124_v54 = vadd.f32 %v1372_v51, %v1371_v49 }
 0x146   : > { %v461_v48 = vadd.f32 %v2118_v36, %v2113_v24  ;;  %v486_v51 = vsub.f32 0.0, %v456_v40  ;;  %v488_v45 = vsub.f32 0.0, %v466_v28 }
 0x147   : > { %v494_v55 = vmul.f32 1.442695, %v476_v52  ;;  %v411_v56 = vadd.f32 %v1337_v53, %v2113_v24  ;;  %v1338_v57 = vpop.f32.mrb[8].mxu0  ;;  %v471_v36 = vadd.f32 %v2124_v54, %v2113_v24 }
 0x148   : > { %v1339_v58 = vpop.f32.mrb[9].mxu0  ;;  %v518_v54 = vmul.f32 1.442695, %v488_v45 }
 0x149   : > { %1585 = vpow2.f32 %v494_v55  ;;  %v477_v59 = vsub.f32 0.0, %v411_v56  ;;  %v1340_v60 = vadd.f32 %v1339_v58, %v1338_v57 }
 0x14b   : > { %v1582_v61 = vpop.eup %1581  ;;  %v496_v62 = vmul.f32 1.442695, %v477_v59  ;;  %v416_v63 = vadd.f32 %v1340_v60, %v2113_v24  ;;  %v1341_v0 = vpop.f32.mrb[10].mxu0  ;;  %v487_v60 = vsub.f32 0.0, %v461_v48 }
 0x14c   : > { %v522_v1 = vadd.f32 1.0, %v1582_v61  ;;  %v1342_v2 = vpop.f32.mrb[11].mxu0 }
 0x14d   : > { %1587 = vpow2.f32 %v496_v62  ;;  %v478_v3 = vsub.f32 0.0, %v416_v63  ;;  %v1343_v4 = vadd.f32 %v1342_v2, %v1341_v0  ;;  %v514_v63 = vmul.f32 1.442695, %v486_v51 }
 0x14e   : > { %1589 = vrcp.f32 %v522_v1 }
 0x14f   : > { %v1584_v5 = vpop.eup %1583  ;;  %v498_v6 = vmul.f32 1.442695, %v478_v3  ;;  %v421_v7 = vadd.f32 %v1343_v4, %v2113_v24  ;;  %v1344_v8 = vpop.f32.mrb[12].mxu0 }
 0x150   : > { %v523_v9 = vadd.f32 1.0, %v1584_v5  ;;  %v1345_v10 = vpop.f32.mrb[13].mxu0  ;;  %v516_v5 = vmul.f32 1.442695, %v487_v60 }
 0x151   : > { %1591 = vpow2.f32 %v498_v6  ;;  %v479_v11 = vsub.f32 0.0, %v421_v7  ;;  %v1346_v12 = vadd.f32 %v1345_v10, %v1344_v8  ;;  %v489_v7 = vsub.f32 0.0, %v471_v36 }
 0x152   : > { %1593 = vrcp.f32 %v523_v9 }
 0x153   : > { %v1586_v13 = vpop.eup %1585  ;;  %v500_v14 = vmul.f32 1.442695, %v479_v11  ;;  %v426_v15 = vadd.f32 %v1346_v12, %v2113_v24  ;;  %v1347_v16 = vpop.f32.mrb[14].mxu0 }
 0x154   : > { %v524_v17 = vadd.f32 1.0, %v1586_v13  ;;  %v1348_v18 = vpop.f32.mrb[15].mxu0  ;;  %v520_v13 = vmul.f32 1.442695, %v489_v7 }
 0x155   : > { %1595 = vpow2.f32 %v500_v14  ;;  %v480_v19 = vsub.f32 0.0, %v426_v15  ;;  %v1349_v20 = vadd.f32 %v1348_v18, %v1347_v16 }
 0x156   : > { %1597 = vrcp.f32 %v524_v17 }
 0x157   : > { %v1588_v21 = vpop.eup %1587  ;;  %v502_v22 = vmul.f32 1.442695, %v480_v19  ;;  %v431_v23 = vadd.f32 %v1349_v20, %v2113_v24  ;;  %v1350_v25 = vpop.f32.mrb[16].mxu0 }
 0x158   : > { %v1590_v26 = vpop.eup %1589  ;;  %v525_v27 = vadd.f32 1.0, %v1588_v21  ;;  %v1351_v29 = vpop.f32.mrb[17].mxu0 }
 0x159   : > { %1599 = vpow2.f32 %v502_v22  ;;  %v481_v30 = vsub.f32 0.0, %v431_v23  ;;  %v1352_v31 = vadd.f32 %v1351_v29, %v1350_v25  ;;  %1402 = vmatprep.mubr.msk.f32.mxu1 %vm565_vm0, %v1590_v26 }
 0x15a   : > { %1601 = vrcp.f32 %v525_v27 }
 0x15b   : > { %v1592_v32 = vpop.eup %1591  ;;  %v504_v33 = vmul.f32 1.442695, %v481_v30  ;;  %v436_v34 = vadd.f32 %v1352_v31, %v2113_v24  ;;  %v1353_v35 = vpop.f32.mrb[18].mxu0 }
 0x15c   : > { %v1594_v37 = vpop.eup %1593  ;;  %v526_v38 = vadd.f32 1.0, %v1592_v32  ;;  %v1354_v39 = vpop.f32.mrb[19].mxu0 }
 0x15d   : > { %1603 = vpow2.f32 %v504_v33  ;;  %v482_v41 = vsub.f32 0.0, %v436_v34  ;;  %v1355_v42 = vadd.f32 %v1354_v39, %v1353_v35  ;;  %1403 = vmatmul.mubr.msk.f32.vlgmr.msra.gmra.mrb[8].mxu1 %vm565_vm0, %v1594_v37 }
 0x15e   : > { %1605 = vrcp.f32 %v526_v38 }
 0x15f   : > { %v1596_v43 = vpop.eup %1595  ;;  %v506_v44 = vmul.f32 1.442695, %v482_v41  ;;  %v441_v46 = vadd.f32 %v1355_v42, %v2113_v24  ;;  %v1356_v47 = vpop.f32.mrb[20].mxu0  ;;  %v1254_v42 = vld [vmem:[%s2464_s4] ss:$0 sm:$0xff] }
 0x160   : > { %v1598_v49 = vpop.eup %1597  ;;  %v527_v50 = vadd.f32 1.0, %v1596_v43  ;;  %v1357_v52 = vpop.f32.mrb[21].mxu0 }
 0x161   : > { %1607 = vpow2.f32 %v506_v44  ;;  %v483_v53 = vsub.f32 0.0, %v441_v46  ;;  %v1358_v55 = vadd.f32 %v1357_v52, %v1356_v47  ;;  %1405 = vmatprep.mubr.msk.f32.mxu1 %vm565_vm0, %v1598_v49 }
 0x162   : > { %1609 = vrcp.f32 %v527_v50 }
 0x163   : > { %v1600_v56 = vpop.eup %1599  ;;  %v508_v57 = vmul.f32 1.442695, %v483_v53  ;;  %v446_v58 = vadd.f32 %v1358_v55, %v2113_v24  ;;  %v1359_v59 = vpop.f32.mrb[22].mxu0 }
 0x164   : > { %v1602_v61 = vpop.eup %1601  ;;  %v528_v62 = vadd.f32 1.0, %v1600_v56  ;;  %v1360_v0 = vpop.f32.mrb[23].mxu0 }
 0x165   : > { %1611 = vpow2.f32 %v508_v57  ;;  %v484_v1 = vsub.f32 0.0, %v446_v58  ;;  %v1361_v2 = vadd.f32 %v1360_v0, %v1359_v59  ;;  %1406 = vmatmul.mubr.msk.f32.gmra.mrb[10].mxu1 %vm565_vm0, %v1602_v61 }
 0x166   : > { %1613 = vrcp.f32 %v528_v62 }
 0x167   : > { %v1604_v3 = vpop.eup %1603  ;;  %v510_v4 = vmul.f32 1.442695, %v484_v1  ;;  %v451_v6 = vadd.f32 %v1361_v2, %v2113_v24  ;;  %1615 = vpow2.f32 %v514_v63 }
 0x168   : > { %v1606_v8 = vpop.eup %1605  ;;  %v529_v9 = vadd.f32 1.0, %v1604_v3 }
 0x169   : > { %1617 = vpow2.f32 %v510_v4  ;;  %v485_v10 = vsub.f32 0.0, %v451_v6  ;;  %1408 = vmatprep.mubr.msk.f32.mxu1 %vm565_vm0, %v1606_v8 }
 0x16a   : > { %1619 = vrcp.f32 %v529_v9 }
 0x16b   : > { %v1608_v11 = vpop.eup %1607  ;;  %1621 = vpow2.f32 %v516_v5  ;;  %v512_v12 = vmul.f32 1.442695, %v485_v10 }
 0x16c   : > { %v1610_v14 = vpop.eup %1609  ;;  %v530_v15 = vadd.f32 1.0, %v1608_v11  ;;  %1623 = vpow2.f32 %v518_v54 }
 0x16d   : > { %1625 = vpow2.f32 %v512_v12  ;;  %1409 = vmatmul.mubr.msk.f32.gmra.mrb[12].mxu1 %vm565_vm0, %v1610_v14 }
 0x16e   : > { %1627 = vrcp.f32 %v530_v15 }
 0x16f   : > { %v1612_v24 = vpop.eup %1611  ;;  %1629 = vpow2.f32 %v520_v13 }
 0x170   : > { %v1614_v16 = vpop.eup %1613  ;;  %v531_v17 = vadd.f32 1.0, %v1612_v24 }
 0x171   : > { %1411 = vmatprep.mubr.msk.f32.mxu1 %vm565_vm0, %v1614_v16  ;;  %v1616_v18 = vpop.eup %1615 }
 0x172   : > { %1631 = vrcp.f32 %v531_v17  ;;  %v534_v26 = vadd.f32 1.0, %v1616_v18 }
 0x173   : > { %v1618_v19 = vpop.eup %1617 }
 0x174   : > { %v1620_v20 = vpop.eup %1619  ;;  %v532_v21 = vadd.f32 1.0, %v1618_v19 }
 0x175   : > { %v1622_v22 = vpop.eup %1621  ;;  %1412 = vmatmul.mubr.msk.f32.gmra.mrb[14].mxu1 %vm565_vm0, %v1620_v20 }
 0x176   : > { %v1624_v23 = vpop.eup %1623  ;;  %1633 = vrcp.f32 %v532_v21  ;;  %v535_v31 = vadd.f32 1.0, %v1622_v22 }
 0x177   : > { %v1626_v25 = vpop.eup %1625  ;;  %v536_v32 = vadd.f32 1.0, %v1624_v23 }
 0x178   : > { %v1628_v27 = vpop.eup %1627  ;;  %v533_v29 = vadd.f32 1.0, %v1626_v25 }
 0x179   : > { %v1630_v30 = vpop.eup %1629  ;;  %1414 = vmatprep.mubr.msk.f32.mxu1 %vm565_vm0, %v1628_v27 }
 0x17a   : > { %1635 = vrcp.f32 %v533_v29  ;;  %v537_v34 = vadd.f32 1.0, %v1630_v30 }
 0x17b   : > { %1637 = vrcp.f32 %v534_v26 }
 0x17c   : > { %v1632_v33 = vpop.eup %1631  ;;  %1639 = vrcp.f32 %v535_v31 }
 0x17d   : > { %1415 = vmatmul.mubr.msk.f32.gmra.mrb[16].mxu1 %vm565_vm0, %v1632_v33  ;;  %1641 = vrcp.f32 %v536_v32 }
 0x17e   : > { %1643 = vrcp.f32 %v537_v34 }
 0x180   : > { %v1634_v35 = vpop.eup %1633 }
 0x181   : > { %1417 = vmatprep.mubr.msk.f32.mxu1 %vm565_vm0, %v1634_v35 }
 0x184   : > { %v1636_v37 = vpop.eup %1635 }
 0x185   : > { %v1638_v38 = vpop.eup %1637  ;;  %1418 = vmatmul.mubr.msk.f32.gmra.mrb[18].mxu1 %vm565_vm0, %v1636_v37 }
 0x186   : > { %1420 = vmatprep.mubr.msk.f32.mxu1 %vm565_vm0, %v1638_v38  ;;  %v1640_v39 = vpop.eup %1639 }
 0x187   : > { %v1642_v40 = vpop.eup %1641 }
 0x188   : > { %v1644_v41 = vpop.eup %1643 }
 0x189   : > { %1421 = vmatmul.mubr.msk.f32.gmra.mrb[20].mxu1 %vm565_vm0, %v1640_v39 }
 0x18a   : > { %1423 = vmatprep.mubr.msk.f32.mxu1 %vm565_vm0, %v1642_v40 }
 0x18d   : > { %1424 = vmatmul.mubr.msk.f32.gmra.mrb[22].mxu1 %vm565_vm0, %v1644_v41 }
 0x230   : > { %v1404_v43 = vpop.f32.mrb[8].mxu1 }
 0x231   : > { %v2162_v44 = vadd.f32 %v1404_v43, %v1254_v42  ;;  %v680_v46 = vpop.f32.mrb[9].mxu1 }
 0x232   : > { %v2164_v47 = vadd.f32 %v1254_v42, %v680_v46 }
 0x233   : > { %v763_v48 = vsel %vm759_vm1, %v2162_v44, -inf }
 0x234   : > { %764 = vmax.xlane.f32.xlu0 %v763_v48  ;;  %v760_v49 = vsel %vm759_vm1, %v2164_v47, -inf }
 0x238   : > { %v1407_v50 = vpop.f32.mrb[10].mxu1  ;;  %761 = vmax.xlane.f32.xlu0 %v760_v49 }
 0x239   : > { %v2170_v51 = vadd.f32 %v1407_v50, %v1254_v42  ;;  %v690_v52 = vpop.f32.mrb[11].mxu1 }
 0x23a   : > { %v2172_v28 = vadd.f32 %v1254_v42, %v690_v52 }
 0x23b   : > { %v769_v53 = vsel %vm759_vm1, %v2170_v51, -inf }
 0x23c   : > { %770 = vmax.xlane.f32.xlu1 %v769_v53  ;;  %v766_v55 = vsel %vm759_vm1, %v2172_v28, -inf }
 0x240   : > { %v1410_v56 = vpop.f32.mrb[12].mxu1  ;;  %767 = vmax.xlane.f32.xlu1 %v766_v55 }
 0x241   : > { %v2178_v57 = vadd.f32 %v1410_v56, %v1254_v42  ;;  %v700_v58 = vpop.f32.mrb[13].mxu1 }
 0x242   : > { %v2180_v59 = vadd.f32 %v1254_v42, %v700_v58 }
 0x243   : > { %v775_v60 = vsel %vm759_vm1, %v2178_v57, -inf }
 0x244   : > { %776 = vmax.xlane.f32.xlu1 %v775_v60  ;;  %v772_v36 = vsel %vm759_vm1, %v2180_v59, -inf }
 0x245   : > { %773 = vmax.xlane.f32.xlu0 %v772_v36 }
 0x248   : > { %v1413_v61 = vpop.f32.mrb[14].mxu1 }
 0x249   : > { %v2186_v62 = vadd.f32 %v1413_v61, %v1254_v42  ;;  %v710_v63 = vpop.f32.mrb[15].mxu1 }
 0x24a   : > { %v2188_v0 = vadd.f32 %v1254_v42, %v710_v63 }
 0x24b   : > { %v781_v45 = vsel %vm759_vm1, %v2186_v62, -inf }
 0x24c   : > { %782 = vmax.xlane.f32.xlu1 %v781_v45  ;;  %v778_v1 = vsel %vm759_vm1, %v2188_v0, -inf }
 0x24d   : > { %779 = vmax.xlane.f32.xlu0 %v778_v1 }
 0x250   : > { %v1416_v2 = vpop.f32.mrb[16].mxu1 }
 0x251   : > { %v2194_v3 = vadd.f32 %v1416_v2, %v1254_v42  ;;  %v720_v4 = vpop.f32.mrb[17].mxu1 }
 0x252   : > { %v2196_v5 = vadd.f32 %v1254_v42, %v720_v4 }
 0x253   : > { %v787_v6 = vsel %vm759_vm1, %v2194_v3, -inf }
 0x254   : > { %788 = vmax.xlane.f32.xlu1 %v787_v6  ;;  %v784_v7 = vsel %vm759_vm1, %v2196_v5, -inf }
 0x255   : > { %785 = vmax.xlane.f32.xlu0 %v784_v7 }
 0x258   : > { %v1419_v8 = vpop.f32.mrb[18].mxu1 }
 0x259   : > { %v2202_v9 = vadd.f32 %v1419_v8, %v1254_v42  ;;  %v730_v54 = vpop.f32.mrb[19].mxu1 }
 0x25a   : > { %v2204_v10 = vadd.f32 %v1254_v42, %v730_v54 }
 0x25b   : > { %v793_v11 = vsel %vm759_vm1, %v2202_v9, -inf }
 0x25c   : > { %v1422_v12 = vpop.f32.mrb[20].mxu1  ;;  %794 = vmax.xlane.f32.xlu1 %v793_v11  ;;  %v790_v13 = vsel %vm759_vm1, %v2204_v10, -inf }
 0x25d   : > { %v2210_v14 = vadd.f32 %v1422_v12, %v1254_v42  ;;  %v740_v15 = vpop.f32.mrb[21].mxu1  ;;  %791 = vmax.xlane.f32.xlu0 %v790_v13 }
 0x25e   : > { %v2212_v24 = vadd.f32 %v1254_v42, %v740_v15 }
 0x25f   : > { %v799_v16 = vsel %vm759_vm1, %v2210_v14, -inf }
 0x260   : > { %v1425_v17 = vpop.f32.mrb[22].mxu1  ;;  %800 = vmax.xlane.f32.xlu1 %v799_v16  ;;  %v796_v18 = vsel %vm759_vm1, %v2212_v24, -inf }
 0x261   : > { %v2218_v19 = vadd.f32 %v1425_v17, %v1254_v42  ;;  %v750_v20 = vpop.f32.mrb[23].mxu1  ;;  %797 = vmax.xlane.f32.xlu0 %v796_v18 }
 0x262   : > { %v2220_v21 = vadd.f32 %v1254_v42, %v750_v20 }
 0x263   : > { %v805_v22 = vsel %vm759_vm1, %v2218_v19, -inf }
 0x264   : > { %806 = vmax.xlane.f32.xlu1 %v805_v22  ;;  %v802_v23 = vsel %vm759_vm1, %v2220_v21, -inf }
 0x265   : > { %803 = vmax.xlane.f32.xlu0 %v802_v23 }
 0x2c1   : > { %v765_v25 = vpop.xlane.xlu0 %764 }
 0x2c2   : > { %v809_v26 = vsub.f32 %v2162_v44, %v765_v25 }
 0x2c4   : > { %v826_v27 = vmul.f32 1.442695, %v809_v26 }
 0x2c5   : > { %v762_v29 = vpop.xlane.xlu0 %761 }
 0x2c6   : > { %1645 = vpow2.f32 %v826_v27  ;;  %v808_v30 = vsub.f32 %v2164_v47, %v762_v29 }
 0x2c8   : > { %v824_v31 = vmul.f32 1.442695, %v808_v30 }
 0x2c9   : > { %v771_v32 = vpop.xlane.xlu1 %770 }
 0x2ca   : > { %1647 = vpow2.f32 %v824_v31  ;;  %v811_v33 = vsub.f32 %v2170_v51, %v771_v32 }
 0x2cc   : > { %v830_v34 = vmul.f32 1.442695, %v811_v33 }
 0x2cd   : > { %v768_v35 = vpop.xlane.xlu1 %767 }
 0x2ce   : > { %1649 = vpow2.f32 %v830_v34  ;;  %v810_v37 = vsub.f32 %v2172_v28, %v768_v35 }
 0x2d0   : > { %v2230_v38 = vpop.eup %1645  ;;  %v828_v39 = vmul.f32 1.442695, %v810_v37 }
 0x2d1   : > { %v777_v40 = vpop.xlane.xlu1 %776  ;;  %v859_v41 = vsel %vm759_vm1, %v2230_v38, 0.0 }
 0x2d2   : > { %1651 = vpow2.f32 %v828_v39  ;;  %v813_v42 = vsub.f32 %v2178_v57, %v777_v40  ;;  %860 = vadd.xlane.f32.xlu1 %v859_v41  ;;  %v774_v43 = vpop.xlane.xlu0 %773 }
 0x2d3   : > { %v812_v44 = vsub.f32 %v2180_v59, %v774_v43 }
 0x2d4   : > { %v2236_v46 = vpop.eup %1647  ;;  %v834_v47 = vmul.f32 1.442695, %v813_v42 }
 0x2d5   : > { %v832_v48 = vmul.f32 1.442695, %v812_v44  ;;  %v856_v49 = vsel %vm759_vm1, %v2236_v46, 0.0 }
 0x2d6   : > { %1653 = vpow2.f32 %v834_v47  ;;  %857 = vadd.xlane.f32.xlu0 %v856_v49 }
 0x2d7   : > { %1655 = vpow2.f32 %v832_v48 }
 0x2d8   : > { %v2240_v50 = vpop.eup %1649 }
 0x2d9   : > { %v783_v51 = vpop.xlane.xlu1 %782  ;;  %v865_v52 = vsel %vm759_vm1, %v2240_v50, 0.0 }
 0x2da   : > { %v815_v28 = vsub.f32 %v2186_v62, %v783_v51  ;;  %866 = vadd.xlane.f32.xlu1 %v865_v52  ;;  %v780_v53 = vpop.xlane.xlu0 %779 }
 0x2db   : > { %v814_v55 = vsub.f32 %v2188_v0, %v780_v53 }
 0x2dc   : > { %v2246_v56 = vpop.eup %1651  ;;  %v838_v57 = vmul.f32 1.442695, %v815_v28 }
 0x2dd   : > { %v836_v58 = vmul.f32 1.442695, %v814_v55  ;;  %v862_v59 = vsel %vm759_vm1, %v2246_v56, 0.0 }
 0x2de   : > { %1657 = vpow2.f32 %v838_v57  ;;  %863 = vadd.xlane.f32.xlu0 %v862_v59 }
 0x2df   : > { %1659 = vpow2.f32 %v836_v58 }
 0x2e0   : > { %v2250_v60 = vpop.eup %1653 }
 0x2e1   : > { %v2252_v36 = vpop.eup %1655  ;;  %v789_v61 = vpop.xlane.xlu1 %788  ;;  %v871_v62 = vsel %vm759_vm1, %v2250_v60, 0.0 }
 0x2e2   : > { %v817_v63 = vsub.f32 %v2194_v3, %v789_v61  ;;  %872 = vadd.xlane.f32.xlu1 %v871_v62  ;;  %v786_v0 = vpop.xlane.xlu0 %785  ;;  %v868_v45 = vsel %vm759_vm1, %v2252_v36, 0.0 }
 0x2e3   : > { %v816_v1 = vsub.f32 %v2196_v5, %v786_v0  ;;  %869 = vadd.xlane.f32.xlu0 %v868_v45 }
 0x2e4   : > { %v842_v2 = vmul.f32 1.442695, %v817_v63 }
 0x2e5   : > { %v840_v4 = vmul.f32 1.442695, %v816_v1 }
 0x2e6   : > { %1661 = vpow2.f32 %v842_v2 }
 0x2e7   : > { %1663 = vpow2.f32 %v840_v4 }
 0x2e8   : > { %v2260_v6 = vpop.eup %1657 }
 0x2e9   : > { %v2262_v7 = vpop.eup %1659  ;;  %v795_v8 = vpop.xlane.xlu1 %794  ;;  %v877_v3 = vsel %vm759_vm1, %v2260_v6, 0.0 }
 0x2ea   : > { %v819_v54 = vsub.f32 %v2202_v9, %v795_v8  ;;  %878 = vadd.xlane.f32.xlu1 %v877_v3  ;;  %v792_v11 = vpop.xlane.xlu0 %791  ;;  %v874_v5 = vsel %vm759_vm1, %v2262_v7, 0.0 }
 0x2eb   : > { %v818_v12 = vsub.f32 %v2204_v10, %v792_v11  ;;  %875 = vadd.xlane.f32.xlu0 %v874_v5 }
 0x2ec   : > { %v846_v13 = vmul.f32 1.442695, %v819_v54 }
 0x2ed   : > { %v844_v15 = vmul.f32 1.442695, %v818_v12  ;;  %v801_v16 = vpop.xlane.xlu1 %800 }
 0x2ee   : > { %1665 = vpow2.f32 %v846_v13  ;;  %v821_v17 = vsub.f32 %v2210_v14, %v801_v16  ;;  %v798_v18 = vpop.xlane.xlu0 %797 }
 0x2ef   : > { %1667 = vpow2.f32 %v844_v15  ;;  %v820_v20 = vsub.f32 %v2212_v24, %v798_v18 }
 0x2f0   : > { %v2272_v22 = vpop.eup %1661  ;;  %v850_v9 = vmul.f32 1.442695, %v821_v17 }
 0x2f1   : > { %v2274_v23 = vpop.eup %1663  ;;  %v848_v25 = vmul.f32 1.442695, %v820_v20  ;;  %v807_v26 = vpop.xlane.xlu1 %806  ;;  %v883_v10 = vsel %vm759_vm1, %v2272_v22, 0.0 }
 0x2f2   : > { %1669 = vpow2.f32 %v850_v9  ;;  %v823_v27 = vsub.f32 %v2218_v19, %v807_v26  ;;  %884 = vadd.xlane.f32.xlu1 %v883_v10  ;;  %v804_v29 = vpop.xlane.xlu0 %803  ;;  %v880_v14 = vsel %vm759_vm1, %v2274_v23, 0.0 }
 0x2f3   : > { %1671 = vpow2.f32 %v848_v25  ;;  %v822_v24 = vsub.f32 %v2220_v21, %v804_v29  ;;  %881 = vadd.xlane.f32.xlu0 %v880_v14 }
 0x2f4   : > { %v854_v30 = vmul.f32 1.442695, %v823_v27 }
 0x2f5   : > { %v852_v31 = vmul.f32 1.442695, %v822_v24 }
 0x2f6   : > { %1673 = vpow2.f32 %v854_v30 }
 0x2f7   : > { %1675 = vpow2.f32 %v852_v31 }
 0x2f8   : > { %v2282_v32 = vpop.eup %1665 }
 0x2f9   : > { %v2284_v33 = vpop.eup %1667  ;;  %v889_v19 = vsel %vm759_vm1, %v2282_v32, 0.0 }
 0x2fa   : > { %890 = vadd.xlane.f32.xlu1 %v889_v19  ;;  %v886_v34 = vsel %vm759_vm1, %v2284_v33, 0.0 }
 0x2fb   : > { %887 = vadd.xlane.f32.xlu0 %v886_v34 }
 0x2fc   : > { %v2290_v35 = vpop.eup %1669 }
 0x2fd   : > { %v2292_v21 = vpop.eup %1671  ;;  %v895_v37 = vsel %vm759_vm1, %v2290_v35, 0.0 }
 0x2fe   : > { %896 = vadd.xlane.f32.xlu1 %v895_v37  ;;  %v892_v39 = vsel %vm759_vm1, %v2292_v21, 0.0 }
 0x2ff   : > { %893 = vadd.xlane.f32.xlu0 %v892_v39 }
 0x300   : > { %v2298_v40 = vpop.eup %1673 }
 0x301   : > { %v2300_v41 = vpop.eup %1675  ;;  %v901_v42 = vsel %vm759_vm1, %v2298_v40, 0.0 }
 0x302   : > { %902 = vadd.xlane.f32.xlu1 %v901_v42  ;;  %v898_v43 = vsel %vm759_vm1, %v2300_v41, 0.0 }
 0x303   : > { %899 = vadd.xlane.f32.xlu0 %v898_v43 }
 0x35f   : > { %v861_v44 = vpop.xlane.xlu1 %860 }
 0x360   : > { %1677 = vrcp.f32 %v861_v44 }
 0x363   : > { %v858_v47 = vpop.xlane.xlu0 %857 }
 0x364   : > { %1679 = vrcp.f32 %v858_v47 }
 0x367   : > { %v867_v48 = vpop.xlane.xlu1 %866 }
 0x368   : > { %1681 = vrcp.f32 %v867_v48 }
 0x36a   : > { %v1678_v49 = vpop.eup %1677 }
 0x36b   : > { %v907_v51 = vmul.f32 %v1678_v49, %v2230_v38  ;;  %v864_v52 = vpop.xlane.xlu0 %863 }
 0x36c   : > { %1683 = vrcp.f32 %v864_v52 }
 0x36d   : > { %937 = vst.msk [vmem:[%s2308_s6 + $0x8] sm:$0xff] %vm759_vm1, %v907_v51 }
 0x36e   : > { %v1680_v28 = vpop.eup %1679 }
 0x36f   : > { %v905_v53 = vmul.f32 %v1680_v28, %v2236_v46  ;;  %v873_v55 = vpop.xlane.xlu1 %872 }
 0x370   : > { %1685 = vrcp.f32 %v873_v55  ;;  %v870_v57 = vpop.xlane.xlu0 %869 }
 0x371   : > { %936 = vst.msk [vmem:[%s2308_s6] sm:$0xff] %vm759_vm1, %v905_v53  ;;  %1687 = vrcp.f32 %v870_v57 }
 0x372   : > { %v1682_v38 = vpop.eup %1681 }
 0x373   : > { %v911_v58 = vmul.f32 %v1682_v38, %v2240_v50 }
 0x375   : > { %939 = vst.msk [vmem:[%s2308_s6 + $0x18] sm:$0xff] %vm759_vm1, %v911_v58 }
 0x376   : > { %v1684_v59 = vpop.eup %1683 }
 0x377   : > { %v909_v61 = vmul.f32 %v1684_v59, %v2246_v56  ;;  %v879_v62 = vpop.xlane.xlu1 %878 }
 0x378   : > { %1689 = vrcp.f32 %v879_v62  ;;  %v876_v63 = vpop.xlane.xlu0 %875 }
 0x379   : > { %938 = vst.msk [vmem:[%s2308_s6 + $0x10] sm:$0xff] %vm759_vm1, %v909_v61  ;;  %1691 = vrcp.f32 %v876_v63 }
 0x37a   : > { %v1686_v46 = vpop.eup %1685 }
 0x37b   : > { %v1688_v0 = vpop.eup %1687  ;;  %v915_v45 = vmul.f32 %v1686_v46, %v2250_v60 }
 0x37c   : > { %v913_v1 = vmul.f32 %v1688_v0, %v2252_v36 }
 0x37d   : > { %941 = vst.msk [vmem:[%s2308_s6 + $0x28] sm:$0xff] %vm759_vm1, %v915_v45 }
 0x37e   : > { %940 = vst.msk [vmem:[%s2308_s6 + $0x20] sm:$0xff] %vm759_vm1, %v913_v1 }
 0x37f   : > { %v885_v50 = vpop.xlane.xlu1 %884 }
 0x380   : > { %1693 = vrcp.f32 %v885_v50  ;;  %v882_v56 = vpop.xlane.xlu0 %881 }
 0x381   : > { %1695 = vrcp.f32 %v882_v56 }
 0x382   : > { %v1690_v2 = vpop.eup %1689 }
 0x383   : > { %v1692_v4 = vpop.eup %1691  ;;  %v919_v8 = vmul.f32 %v1690_v2, %v2260_v6 }
 0x384   : > { %v917_v3 = vmul.f32 %v1692_v4, %v2262_v7 }
 0x385   : > { %943 = vst.msk [vmem:[%s2308_s6 + $0x38] sm:$0xff] %vm759_vm1, %v919_v8 }
 0x386   : > { %942 = vst.msk [vmem:[%s2308_s6 + $0x30] sm:$0xff] %vm759_vm1, %v917_v3 }
 0x387   : > { %v891_v60 = vpop.xlane.xlu1 %890 }
 0x388   : > { %1697 = vrcp.f32 %v891_v60  ;;  %v888_v36 = vpop.xlane.xlu0 %887 }
 0x389   : > { %1699 = vrcp.f32 %v888_v36 }
 0x38a   : > { %v1694_v54 = vpop.eup %1693 }
 0x38b   : > { %v1696_v11 = vpop.eup %1695  ;;  %v923_v5 = vmul.f32 %v1694_v54, %v2272_v22  ;;  %v897_v12 = vpop.xlane.xlu1 %896 }
 0x38c   : > { %v921_v13 = vmul.f32 %v1696_v11, %v2274_v23  ;;  %1701 = vrcp.f32 %v897_v12  ;;  %v894_v6 = vpop.xlane.xlu0 %893 }
 0x38d   : > { %945 = vst.msk [vmem:[%s2308_s6 + $0x48] sm:$0xff] %vm759_vm1, %v923_v5  ;;  %1703 = vrcp.f32 %v894_v6 }
 0x38e   : > { %944 = vst.msk [vmem:[%s2308_s6 + $0x40] sm:$0xff] %vm759_vm1, %v921_v13 }
 0x38f   : > { %v903_v7 = vpop.xlane.xlu1 %902 }
 0x390   : > { %1705 = vrcp.f32 %v903_v7  ;;  %v900_v15 = vpop.xlane.xlu0 %899 }
 0x391   : > { %1707 = vrcp.f32 %v900_v15 }
 0x392   : > { %v1698_v16 = vpop.eup %1697 }
 0x393   : > { %v1700_v17 = vpop.eup %1699  ;;  %v927_v18 = vmul.f32 %v1698_v16, %v2282_v32 }
 0x394   : > { %v925_v20 = vmul.f32 %v1700_v17, %v2284_v33 }
 0x395   : > { %947 = vst.msk [vmem:[%s2308_s6 + $0x58] sm:$0xff] %vm759_vm1, %v927_v18 }
 0x396   : > { %v1702_v22 = vpop.eup %1701  ;;  %946 = vst.msk [vmem:[%s2308_s6 + $0x50] sm:$0xff] %vm759_vm1, %v925_v20 }
 0x397   : > { %v1704_v9 = vpop.eup %1703  ;;  %v931_v23 = vmul.f32 %v1702_v22, %v2290_v35 }
 0x398   : > { %v929_v25 = vmul.f32 %v1704_v9, %v2292_v21  ;;  %958 = sbr.rel (!%p1910_p8) target bundleno = 976 (0x3d0), region = 48 }
 0x399   : > { %949 = vst.msk [vmem:[%s2308_s6 + $0x68] sm:$0xff] %vm759_vm1, %v931_v23 }
 0x39a   : > { %v1706_v26 = vpop.eup %1705  ;;  %948 = vst.msk [vmem:[%s2308_s6 + $0x60] sm:$0xff] %vm759_vm1, %v929_v25 }
 0x39b   : > { %v1708_v10 = vpop.eup %1707  ;;  %v935_v27 = vmul.f32 %v1706_v26, %v2298_v40 }
 0x39c   : > { %v933_v29 = vmul.f32 %v1708_v10, %v2300_v41 }
 0x39d   : > { %951 = vst.msk [vmem:[%s2308_s6 + $0x78] sm:$0xff] %vm759_vm1, %v935_v27 }
 0x39e   : > { %950 = vst.msk [vmem:[%s2308_s6 + $0x70] sm:$0xff] %vm759_vm1, %v933_v29 }
 0x39f   : > { %s2478_s7 = smov (!%p961_p7, %s960_s7), 16 }
 0x3a0   : > { %s1273_s13 = sshll.u32 %s2478_s7, 7 }
 0x3a1   : > { %p1276_p11 = scmp.eq.s32.totalorder %s1273_s13, 0 }
 0x3a2   : > { %s2370_s28 = sshrl.u32 (!%p1276_p11), %s2478_s7, 4 }
 0x3a3   : > { %969 = sbr.rel (%p1276_p11) target bundleno = 976 (0x3d0), region = 52  ;;  %p1277_p8 = scmp.le.s32.totalorder (!%p1276_p11), %s2370_s28, 0 }
 0x3aa   : > { %1191 = sbr.rel (%p1277_p8) target bundleno = 955 (0x3bb), region = 134  ;;  %s2468_s22 = smov (!%p1277_p8), %s2364_s12 }
 0x3ab   : > { %s2469_s17 = smov (!%p1277_p8), %s2308_s6  ;;  %s2379_s18 = smov (!%p1277_p8), 0  }
 0x3ac   : > { %s2381_s8 = smov (!%p1277_p8), 0  }
 0x3b1 LB: >> { %v1061_v14 = vld [vmem:[%s1811_s17] sm:$0xff]  ;;  %v1063_v24 = vld [vmem:[%s1811_s17 + $0x8] sm:$0xff]  ;;  %v1065_v30 = vld [vmem:[%s1811_s17 + $0x10] sm:$0xff]  ;;  %s1093_s10 = sadd.s32 1, %s1815_s18  ;;  %s1055_s8 = sadd.s32 1, %s1819_s8   ;;  %s1819_s8 = sphi %s2381_s8, %s1055_s8   ;;  %s1815_s18 = sphi %s2379_s18, %s2470_s18   ;;  %s1811_s17 = sphi %s2469_s17, %s1098_s17   ;;  %s1807_s22 = sphi %s2468_s22, %s1099_s22  }
 0x3b2   : >> { %1062 = vst [vmem:[%s1807_s22] sm:$0xff] %v1061_v14  ;;  %1064 = vst [vmem:[%s1807_s22 + $0x8] sm:$0xff] %v1063_v24  ;;  %v1067_v31 = vld [vmem:[%s1811_s17 + $0x18] sm:$0xff]  ;;  %v1069_v32 = vld [vmem:[%s1811_s17 + $0x20] sm:$0xff]  ;;  %p1094_p6 = scmp.ge.s32.totalorder %s1093_s10, %s2370_s28  ;;  %p1054_p9 = scmp.ge.s32.totalorder %s1055_s8, %s2370_s28 }
 0x3b3   : >> { %1066 = vst [vmem:[%s1807_s22 + $0x10] sm:$0xff] %v1065_v30  ;;  %v1071_v33 = vld [vmem:[%s1811_s17 + $0x28] sm:$0xff]  ;;  %1068 = vst [vmem:[%s1807_s22 + $0x18] sm:$0xff] %v1067_v31  ;;  %v1073_v19 = vld [vmem:[%s1811_s17 + $0x30] sm:$0xff] }
 0x3b4   : >> { %1070 = vst [vmem:[%s1807_s22 + $0x20] sm:$0xff] %v1069_v32  ;;  %1072 = vst [vmem:[%s1807_s22 + $0x28] sm:$0xff] %v1071_v33  ;;  %v1075_v34 = vld [vmem:[%s1811_s17 + $0x38] sm:$0xff]  ;;  %v1077_v35 = vld [vmem:[%s1811_s17 + $0x40] sm:$0xff]  ;;  %s2480_s10 = smov (%p1094_p6, %s1093_s10), 0  ;;  %1057 = sbr.rel (!%p1054_p9) target bundleno = 945 (0x3b1), region = 140 }
 0x3b5   : >> { %1074 = vst [vmem:[%s1807_s22 + $0x30] sm:$0xff] %v1073_v19  ;;  %1076 = vst [vmem:[%s1807_s22 + $0x38] sm:$0xff] %v1075_v34  ;;  %v1079_v21 = vld [vmem:[%s1811_s17 + $0x48] sm:$0xff]  ;;  %v1081_v37 = vld [vmem:[%s1811_s17 + $0x50] sm:$0xff]  ;;  %s1278_s21 = sshll.u32 %s2480_s10, 7  ;;  %s2470_s18 = smov %s2480_s10 }
 0x3b6   : >> { %1078 = vst [vmem:[%s1807_s22 + $0x40] sm:$0xff] %v1077_v35  ;;  %v1083_v39 = vld [vmem:[%s1811_s17 + $0x58] sm:$0xff]  ;;  %1080 = vst [vmem:[%s1807_s22 + $0x48] sm:$0xff] %v1079_v21  ;;  %v1085_v40 = vld [vmem:[%s1811_s17 + $0x60] sm:$0xff] }
 0x3b7   : >> { %1082 = vst [vmem:[%s1807_s22 + $0x50] sm:$0xff] %v1081_v37  ;;  %1084 = vst [vmem:[%s1807_s22 + $0x58] sm:$0xff] %v1083_v39  ;;  %v1087_v41 = vld [vmem:[%s1811_s17 + $0x68] sm:$0xff]  ;;  %v1089_v42 = vld [vmem:[%s1811_s17 + $0x70] sm:$0xff] }
 0x3b8   : >> { %1086 = vst [vmem:[%s1807_s22 + $0x60] sm:$0xff] %v1085_v40  ;;  %1088 = vst [vmem:[%s1807_s22 + $0x68] sm:$0xff] %v1087_v41  ;;  %v1091_v43 = vld [vmem:[%s1811_s17 + $0x78] sm:$0xff]  ;;  %s1098_s17 = scalar_lea.vmem %s2308_s6, %s1278_s21 [#allocation4]  }
 0x3b9   : >> { %1090 = vst [vmem:[%s1807_s22 + $0x70] sm:$0xff] %v1089_v42  ;;  %1092 = vst [vmem:[%s1807_s22 + $0x78] sm:$0xff] %v1091_v43  ;;  %s1099_s22 = scalar_lea.vmem %s2364_s12, %s1278_s21  }
 0x3bb PF: > { %s2439_s15 = sand.u32 15, %s2478_s7   ;;  %s1292_s24 = sshll.u32 %s2370_s28, 7 }
 0x3bc   : > { %s1104_s16 = scalar_lea.vmem %s2308_s6, %s1292_s24 [#allocation4]   ;;  %s1106_s25 = scalar_lea.vmem %s2364_s12, %s1292_s24  }
 0x3bd   : > { %p1283_p10 = scmp.le.s32.totalorder %s2439_s15, 0 }
 0x3be   : > { %s1821_s29 = smov (!%p1283_p10), %s1106_s25   ;;  %s1825_s30 = smov (!%p1283_p10), %s1104_s16  }
 0x3bf   : > { %1205 = sbr.rel (%p1283_p10) target bundleno = 976 (0x3d0), region = 145  ;;  %s1829_s14 = smov (!%p1283_p10), 0  }
 0x3c0   : > { %s1833_s27 = smov (!%p1283_p10), 0  }
 0x3c6 LB: >> { %v1116_v44 = vld [vmem:[%s1827_s30] sm:$0xff]  ;;  %s1118_s7 = sadd.s32 1, %s1831_s14  ;;  %s1110_s27 = sadd.s32 1, %s1835_s27   ;;  %s1835_s27 = sphi %s1833_s27, %s1110_s27   ;;  %s1831_s14 = sphi %s1829_s14, %s1830_s14   ;;  %s1827_s30 = sphi %s1825_s30, %s1123_s30   ;;  %s1823_s29 = sphi %s1821_s29, %s1124_s29  }
 0x3c7   : >> { %1117 = vst [vmem:[%s1823_s29] sm:$0xff] %v1116_v44  ;;  %p1119_p12 = scmp.ge.s32.totalorder %s1118_s7, %s2439_s15  ;;  %p1109_p13 = scmp.ge.s32.totalorder %s1110_s27, %s2439_s15 }
 0x3c9   : >> { %s2482_s7 = smov (%p1119_p12, %s1118_s7), 0  ;;  %1112 = sbr.rel (!%p1109_p13) target bundleno = 966 (0x3c6), region = 151 }
 0x3ca   : >> { %s1284_s6 = sshll.u32 %s2482_s7, 3  ;;  %s1830_s14 = smov %s2482_s7  }
 0x3cb   : >> { %s1123_s30 = scalar_lea.vmem %s1104_s16, %s1284_s6 [#allocation4]   ;;  %s1124_s29 = scalar_lea.vmem %s1106_s25, %s1284_s6  }
 0x3d0 PF: > { %p15_p1 = scmp.ge.s32.totalorder %s1892_s23, 5   ;;  %s2471_s18 = smov %s1795_s19 }
 0x3d1   : > { %s2472_s19 = smov %s1799_s20  ;;  %s2473_s20 = smov %s1902_s26 }
 0x3d2   : > { %s2474_s21 = smov %s1892_s23  ;;  %17 = sbr.rel (!%p15_p1) target bundleno = 3 (0x3), region = 162 }
 0x3d9   :  { %1140 = vsyncpa [#allocation3], 1 }
 0x3da   :  { %1142 = vsyncpa [#allocation3 + $0x1], 1 }

// kernel: tpu_custom_call.1
= control target key start
LH: loop header
LB: loop body
LE: loop exit
PB: predicated region body
PF: predicated region fallthrough
CT: control target
= control target key end

     0   :  { %10 = vsyncpa [#allocation3], 0  ;;  %s2460_s0 = inlined_call_operand.hbm [shape: f32[300,256], index: 0, kind: input, shape index: {}]   ;;  %s2461_s1 = inlined_call_operand.vmem [shape: f32[256,32], index: 1, kind: input, shape index: {}]   ;;  %s2462_s2 = inlined_call_operand.vmem [shape: f32[1,32], index: 2, kind: input, shape index: {}]   ;;  %s2463_s3 = inlined_call_operand.vmem [shape: f32[32,3], index: 3, kind: input, shape index: {}]   ;;  %s2464_s4 = inlined_call_operand.vmem [shape: f32[1,3], index: 4, kind: input, shape index: {}]   ;;  %s2465_s5 = inlined_call_operand.vmem [shape: f32[300,3], index: 5, kind: output, shape index: {}]  }
   0x1   :  { %12 = vsyncpa [#allocation3 + $0x1], 0  ;;  %s1870_s18 = smov 0   ;;  %s1872_s19 = smov 0  }
   0x2   :  { %s1874_s20 = smov 0   ;;  %s1876_s21 = smov 0  }
   0x3 LB: > { %s1889_s22 = sadd.s32 4294967295, %s1803_s21   ;;  %s1892_s23 = sadd.s32 1, %s1803_s21   ;;  %s1803_s21 = sphi %s1876_s21, %s2474_s21   ;;  %s1799_s20 = sphi %s1874_s20, %s2473_s20   ;;  %s1795_s19 = sphi %s1872_s19, %s2472_s19   ;;  %s1791_s18 = sphi %s1870_s18, %s2471_s18  }
   0x4   : > { %s22_s24 = ssub.s32 %s1803_s21, %s1892_s23  ;;  %s25_s25 = sadd.s32 1, %s1799_s20 }
   0x5   : > { %p23_p0 = scmp.eq.s32.totalorder %s22_s24, 0  ;;  %p32_p1 = scmp.ne.s32.totalorder %s1799_s20, %s1795_s19 }
   0x6   : > { %p33_p2 = scmp.eq.s32.totalorder %s1803_s21, 0  ;;  %p38_p3 = scmp.ne.s32.totalorder %s1795_s19, %s1791_s18 }
   0x7   : > { %s1902_s26 = scalar_select %p23_p0, %s1799_s20, %s25_s25  }
   0x8   : > { %p34_p4 = por %p33_p2, %p32_p1  ;;  %p39_p5 = scmp.eq.s32.totalorder %s1889_s22, 0 }
   0x9   : > { %p146_p6 = scmp.eq.s32.totalorder %s1889_s22, 2  ;;  %p1240_p9 = scmp.ge.s32.totalorder %s1803_s21, 3 }
   0xa   : > { %p1906_p7 = por %p39_p5, %p38_p3 }
   0xb   : > { %p1910_p8 = por %p146_p6, %p32_p1  ;;  %180 = sbr.rel (%p1240_p9) target bundleno = 53 (0x35), region = 32 }
  0x12   : > { %183 = sbr.rel (!%p34_p4) target bundleno = 53 (0x35), region = 36  ;;  %s184_s29 = sand.u32 (%p34_p4), 1, %s1799_s20  }
  0x13   : > { %s1242_s30 = sshll.u32 (%p34_p4), %s1803_s21, 4  ;;  %s1241_s6 = sshll.u32 (%p34_p4), %s184_s29, 8 }
  0x14   : > { %s190_s7 = ssub.s32 (%p34_p4), 38, %s1242_s30  ;;  %s1920_s10 = scalar_lea.sflag (%p34_p4), [#allocation3], %s184_s29 }
  0x15   : > { %p191_p10 = scmp.lt.s32.totalorder (%p34_p4), %s190_s7, 16  ;;  %s188_s11 = scalar_lea.vmem (%p34_p4), [#allocation2], %s1241_s6 }
  0x19   : > { %s2476_s7 = smov (!%p191_p10, %s190_s7), 16 }
  0x1a   : > { %s1917_s8 = sshll.u32 %s2476_s7, 8 }
  0x1b   : > { %s196_s9 = ssub.s32 4096, %s1917_s8 }
  0x1c   : > { %197 = vsyncadd %s1920_s10, %s196_s9  ;;  %p1245_p11 = scmp.ne.s32.totalorder %s1917_s8, 0  ;;  %s1290_s12 = sshll.u32 %s1803_s21, 12 }
  0x1d   : > { %s1928_s15 = scalar_lea.hbm %s2460_s0, %s1290_s12  ;;  %s203_s16 = sshll.u32 %s188_s11, 4  ;;  %s1930_s16 = int_to_ptr.vmem [resolvable:$true] %s203_s16 }
  0x1e   : > { %s1709_s17 = scalar_lea.hbm %s1928_s15, %s1917_s8  ;;  %s1713_s25 = scalar_lea.hbm %s2460_s0, 9728 }
  0x1f   : > { %p1710_p12 = scmp.ne.s32.totalorder %s1928_s15, %s1709_s17  ;;  %p1714_p1 = scmp.lt.u32.totalorder %s1928_s15, %s2460_s0 }
  0x20   : > { %p1715_p2 = scmp.lt.u32.totalorder %s1713_s25, %s1709_s17  ;;  %p1717_p4 = scmp.lt.u32.totalorder %s1709_s17, %s1928_s15 }
  0x21   : > { %p1711_p13 = pnand %p1710_p12, %p1245_p11 }
  0x22   : > { %p1716_p3 = por %p1715_p2, %p1714_p1 }
  0x23   : > { %p1712_p0 = pneg %p1711_p13 }
  0x24   : > { %p1718_p5 = por %p1717_p4, %p1716_p3 }
  0x26   : > { %p1719_p6 = pnand %p1718_p5, %p1712_p0 }
  0x28   : > { %1722 = shalt.err (!%p1719_p6)
}
  0x29   : > { %s1723_s6 = scalar_lea.vmem %s1930_s16, %s1917_s8  ;;  %s1837_s7 = smov [#allocation2]  }
  0x2a   : > { %p1724_p9 = scmp.ne.s32.totalorder %s1930_s16, %s1723_s6  ;;  %s1727_s9 = sshll.u32 %s1837_s7, 4  ;;  %s1728_s9 = int_to_ptr.vmem [resolvable:$false] %s1727_s9 }
  0x2b   : > { %s1729_s11 = scalar_lea.vmem %s1728_s9, 8192  ;;  %p1730_p13 = scmp.lt.s32.totalorder %s1930_s16, %s1728_s9 }
  0x2c   : > { %p1725_p10 = pnand %p1724_p9, %p1245_p11  ;;  %p1731_p1 = scmp.lt.s32.totalorder %s1729_s11, %s1723_s6 }
  0x2e   : > { %p1726_p12 = pneg %p1725_p10  ;;  %p1732_p2 = por %p1731_p1, %p1730_p13 }
  0x30   : > { %p1733_p3 = pnand %p1732_p2, %p1726_p12 }
  0x32   : > { %1736 = shalt.err (!%p1733_p3)
}
  0x33   : > { %s1838_s12 = smov 256   ;;  %s1839_s13 = smov 16  }
  0x34   : > { %209 = dma.hbm_to_vmem [thread:$0]  (%p1245_p11), %s1928_s15, %s1917_s8, %s1930_s16, %s1920_s10, %s1838_s12, %s1838_s12, %s1839_s13  }
  0x35 PF: > { %p1250_p0 = scmp.ge.s32.totalorder %s1803_s21, 1  ;;  %p211_p4 = scmp.lt.s32.totalorder %s1803_s21, 4 }
  0x37   : > { %p212_p5 = pnand %p1250_p0, %p211_p4 }
  0x38   : > { %s1960_s14 = sand.u32 (!%p212_p5), 1, %s1795_s19  }
  0x39   : > { %215 = sbr.rel (%p212_p5) target bundleno = 976 (0x3d0), region = 40  ;;  %s1251_s17 = sshll.u32 (!%p212_p5), %s1960_s14, 8 }
  0x3a   : > { %s218_s18 = scalar_lea.sflag (!%p212_p5), [#allocation3], %s1960_s14  ;;  %s1964_s24 = scalar_lea.vmem (!%p212_p5), [#allocation2], %s1251_s17 }
  0x40   : > { %1786 = dma.done.wait (%p1906_p7), %s218_s18, 4096  }
  0x41   : > { %1788 = vsyncadd (%p1906_p7), %s218_s18, 4294963200  ;;  %v306_v0 = vld [vmem:[%s2461_s1 + $0x80] sm:$0xff]  ;;  %v307_v1 = vld [vmem:[%s2461_s1 + $0x88] sm:$0xff]  ;;  %vm565_vm0 = vcmask 261120   ;;  %vm759_vm1 = vcmask 23552   ;;  %s1252_s30 = sshll.u32 %s1960_s14, 7 }
  0x42   : > { %v290_v2 = vld [vmem:[%s2461_s1] sm:$0xff]  ;;  %v1426_v3 = vpack.c.bf16 %v307_v1, %v306_v0  ;;  %v291_v4 = vld [vmem:[%s2461_s1 + $0x8] sm:$0xff]  ;;  %v308_v5 = vld [vmem:[%s2461_s1 + $0x90] sm:$0xff]  ;;  %s2308_s6 = scalar_lea.vmem [#allocation4], %s1252_s30   ;;  %s1272_s14 = sshll.u32 (%p1910_p8), %s1889_s22, 4 }
  0x43   : > { %v309_v6 = vld [vmem:[%s2461_s1 + $0x98] sm:$0xff]  ;;  %v1428_v7 = vpack.c.bf16 %v291_v4, %v290_v2  ;;  %v292_v9 = vld [vmem:[%s2461_s1 + $0x10] sm:$0xff]  ;;  %v310_v11 = vld [vmem:[%s2461_s1 + $0xa0] sm:$0xff]  ;;  %s1291_s27 = sshll.u32 (%p1910_p8), %s1889_s22, 7  ;;  %s960_s7 = ssub.s32 (%p1910_p8), 38, %s1272_s14 }
  0x44   : > { %v1430_v8 = vpack.c.bf16 %v309_v6, %v308_v5  ;;  %v293_v10 = vld [vmem:[%s2461_s1 + $0x18] sm:$0xff]  ;;  %1427 = vmatprep.subr.bf16.mxu0 %v1426_v3  ;;  %v311_v12 = vld [vmem:[%s2461_s1 + $0xa8] sm:$0xff]  ;;  %1466 = vmatprep.subr.bf16.mxu1 %v1426_v3  ;;  %v294_v15 = vld [vmem:[%s2461_s1 + $0x20] sm:$0xff]  ;;  %s2364_s12 = scalar_lea.vmem (%p1910_p8), %s2465_s5, %s1291_s27   ;;  %p961_p7 = scmp.lt.s32.totalorder (%p1910_p8), %s960_s7, 16 }
  0x45   : > { %1429 = vmatpush3.bf16.msra.mxu0 %v1428_v7  ;;  %v1432_v13 = vpack.c.bf16 %v293_v10, %v292_v9  ;;  %1474 = vmatpush3.bf16.msra.mxu1 %v1428_v7  ;;  %v1434_v14 = vpack.c.bf16 %v311_v12, %v310_v11  ;;  %v295_v16 = vld [vmem:[%s2461_s1 + $0x28] sm:$0xff]  ;;  %v312_v17 = vld [vmem:[%s2461_s1 + $0xb0] sm:$0xff]  ;;  %v313_v18 = vld [vmem:[%s2461_s1 + $0xb8] sm:$0xff] }
  0x46   : > { %1431 = vmatprep.subr.bf16.mxu0 %v1430_v8  ;;  %1467 = vmatprep.subr.bf16.mxu1 %v1430_v8  ;;  %v1436_v19 = vpack.c.bf16 %v295_v16, %v294_v15  ;;  %v1438_v20 = vpack.c.bf16 %v313_v18, %v312_v17  ;;  %v296_v21 = vld [vmem:[%s2461_s1 + $0x30] sm:$0xff]  ;;  %v297_v22 = vld [vmem:[%s2461_s1 + $0x38] sm:$0xff]  ;;  %v314_v23 = vld [vmem:[%s2461_s1 + $0xc0] sm:$0xff] }
  0x47   : > { %v315_v24 = vld [vmem:[%s2461_s1 + $0xc8] sm:$0xff]  ;;  %v1440_v26 = vpack.c.bf16 %v297_v22, %v296_v21  ;;  %v298_v28 = vld [vmem:[%s2461_s1 + $0x40] sm:$0xff]  ;;  %v316_v30 = vld [vmem:[%s2461_s1 + $0xd0] sm:$0xff] }
  0x48   : > { %v259_v25 = vld [vmem:[%s1964_s24 + $0x8] sm:$0xff]  ;;  %v1442_v27 = vpack.c.bf16 %v315_v24, %v314_v23  ;;  %v317_v31 = vld [vmem:[%s2461_s1 + $0xd8] sm:$0xff]  ;;  %v300_v34 = vld [vmem:[%s2461_s1 + $0x50] sm:$0xff] }
  0x49   : > { %1433 = vmatpush3.bf16.msra.mxu0 %v1432_v13  ;;  %1475 = vmatpush3.bf16.msra.mxu1 %v1432_v13  ;;  %v299_v29 = vld [vmem:[%s2461_s1 + $0x48] sm:$0xff]  ;;  %v1446_v33 = vpack.c.bf16 %v317_v31, %v316_v30  ;;  %v301_v35 = vld [vmem:[%s2461_s1 + $0x58] sm:$0xff]  ;;  %v318_v37 = vld [vmem:[%s2461_s1 + $0xe0] sm:$0xff] }
  0x4a   : > { %1435 = vmatprep.subr.bf16.mxu0 %v1434_v14  ;;  %1468 = vmatprep.subr.bf16.mxu1 %v1434_v14  ;;  %v1444_v32 = vpack.c.bf16 %v299_v29, %v298_v28  ;;  %v283_v36 = vld [vmem:[%s1964_s24 + $0xc8] sm:$0xff]  ;;  %v1448_v39 = vpack.c.bf16 %v301_v35, %v300_v34  ;;  %v302_v41 = vld [vmem:[%s2461_s1 + $0x60] sm:$0xff]  ;;  %v320_v43 = vld [vmem:[%s2461_s1 + $0xf0] sm:$0xff] }
  0x4b   : > { %393 = vmatprep.mubr.f32.mxu0 %v259_v25  ;;  %v319_v38 = vld [vmem:[%s2461_s1 + $0xe8] sm:$0xff]  ;;  %453 = vmatprep.mubr.f32.mxu1 %v283_v36  ;;  %v321_v44 = vld [vmem:[%s2461_s1 + $0xf8] sm:$0xff]  ;;  %v304_v47 = vld [vmem:[%s2461_s1 + $0x70] sm:$0xff] }
  0x4c   : > { %v1450_v40 = vpack.c.bf16 %v319_v38, %v318_v37  ;;  %v303_v42 = vld [vmem:[%s2461_s1 + $0x68] sm:$0xff]  ;;  %v1454_v46 = vpack.c.bf16 %v321_v44, %v320_v43  ;;  %v305_v48 = vld [vmem:[%s2461_s1 + $0x78] sm:$0xff]  ;;  %v258_v50 = vld [vmem:[%s1964_s24] sm:$0xff] }
  0x4d   : > { %1437 = vmatpush3.bf16.msra.mxu0 %v1436_v19  ;;  %1476 = vmatpush3.bf16.msra.mxu1 %v1436_v19  ;;  %v1452_v45 = vpack.c.bf16 %v303_v42, %v302_v41  ;;  %v1456_v49 = vpack.c.bf16 %v305_v48, %v304_v47  ;;  %v282_v51 = vld [vmem:[%s1964_s24 + $0xc0] sm:$0xff]  ;;  %v261_v52 = vld [vmem:[%s1964_s24 + $0x18] sm:$0xff]  ;;  %v260_v54 = vld [vmem:[%s1964_s24 + $0x10] sm:$0xff] }
  0x4e   : > { %1439 = vmatprep.subr.bf16.mxu0 %v1438_v20  ;;  %1469 = vmatprep.subr.bf16.mxu1 %v1438_v20  ;;  %v285_v53 = vld [vmem:[%s1964_s24 + $0xd8] sm:$0xff]  ;;  %v284_v55 = vld [vmem:[%s1964_s24 + $0xd0] sm:$0xff]  ;;  %v263_v56 = vld [vmem:[%s1964_s24 + $0x28] sm:$0xff] }
  0x4f   : > { %v287_v57 = vld [vmem:[%s1964_s24 + $0xe8] sm:$0xff]  ;;  %v262_v58 = vld [vmem:[%s1964_s24 + $0x20] sm:$0xff]  ;;  %v265_v60 = vld [vmem:[%s1964_s24 + $0x38] sm:$0xff] }
  0x50   : > { %v286_v59 = vld [vmem:[%s1964_s24 + $0xe0] sm:$0xff]  ;;  %v289_v61 = vld [vmem:[%s1964_s24 + $0xf8] sm:$0xff]  ;;  %v264_v62 = vld [vmem:[%s1964_s24 + $0x30] sm:$0xff] }
  0x51   : > { %1441 = vmatpush3.bf16.msra.mxu0 %v1440_v26  ;;  %1477 = vmatpush3.bf16.msra.mxu1 %v1440_v26  ;;  %v288_v63 = vld [vmem:[%s1964_s24 + $0xf0] sm:$0xff]  ;;  %v267_v0 = vld [vmem:[%s1964_s24 + $0x48] sm:$0xff]  ;;  %v266_v1 = vld [vmem:[%s1964_s24 + $0x40] sm:$0xff] }
  0x52   : > { %1443 = vmatprep.subr.bf16.mxu0 %v1442_v27  ;;  %1470 = vmatprep.subr.bf16.mxu1 %v1442_v27  ;;  %v269_v2 = vld [vmem:[%s1964_s24 + $0x58] sm:$0xff]  ;;  %v268_v3 = vld [vmem:[%s1964_s24 + $0x50] sm:$0xff]  ;;  %v271_v4 = vld [vmem:[%s1964_s24 + $0x68] sm:$0xff] }
  0x53   : > { %v270_v5 = vld [vmem:[%s1964_s24 + $0x60] sm:$0xff]  ;;  %v273_v6 = vld [vmem:[%s1964_s24 + $0x78] sm:$0xff]  ;;  %v272_v7 = vld [vmem:[%s1964_s24 + $0x70] sm:$0xff] }
  0x54   : > { %v275_v8 = vld [vmem:[%s1964_s24 + $0x88] sm:$0xff]  ;;  %v274_v9 = vld [vmem:[%s1964_s24 + $0x80] sm:$0xff]  ;;  %v277_v10 = vld [vmem:[%s1964_s24 + $0x98] sm:$0xff] }
  0x55   : > { %1445 = vmatpush3.bf16.msra.mxu0 %v1444_v32  ;;  %1478 = vmatpush3.bf16.msra.mxu1 %v1444_v32  ;;  %v276_v11 = vld [vmem:[%s1964_s24 + $0x90] sm:$0xff]  ;;  %v279_v12 = vld [vmem:[%s1964_s24 + $0xa8] sm:$0xff]  ;;  %v278_v13 = vld [vmem:[%s1964_s24 + $0xa0] sm:$0xff] }
  0x56   : > { %1447 = vmatprep.subr.bf16.mxu0 %v1446_v33  ;;  %1471 = vmatprep.subr.bf16.mxu1 %v1446_v33  ;;  %v281_v14 = vld [vmem:[%s1964_s24 + $0xb8] sm:$0xff]  ;;  %v280_v15 = vld [vmem:[%s1964_s24 + $0xb0] sm:$0xff]  ;;  %v554_v16 = vld [vmem:[%s2463_s3] sm:$0xff] }
  0x57   : > { %v555_v17 = vld [vmem:[%s2463_s3 + $0x8] sm:$0xff]  ;;  %v556_v19 = vld [vmem:[%s2463_s3 + $0x10] sm:$0xff]  ;;  %v557_v20 = vld [vmem:[%s2463_s3 + $0x18] sm:$0xff] }
  0x58   : > { %v1458_v18 = vpack.c.bf16 %v555_v17, %v554_v16  ;;  %v1462_v21 = vpack.c.bf16 %v557_v20, %v556_v19  ;;  %v2113_v24 = vld [vmem:[%s2462_s2] ss:$0 sm:$0xff] }
  0x59   : > { %1449 = vmatpush3.bf16.msra.mxu0 %v1448_v39  ;;  %1479 = vmatpush3.bf16.msra.mxu1 %v1448_v39 }
  0x5a   : > { %1451 = vmatprep.subr.bf16.mxu0 %v1450_v40  ;;  %1472 = vmatprep.subr.bf16.mxu1 %v1450_v40 }
  0x5d   : > { %1453 = vmatpush3.bf16.msra.mxu0 %v1452_v45  ;;  %1480 = vmatpush3.bf16.msra.mxu1 %v1452_v45 }
  0x5e   : > { %1455 = vmatprep.subr.bf16.mxu0 %v1454_v46  ;;  %1473 = vmatprep.subr.bf16.mxu1 %v1454_v46 }
  0x61   : > { %1457 = vmatpush3.bf16.msra.mxu0 %v1456_v49  ;;  %1481 = vmatpush3.bf16.msra.mxu1 %v1456_v49 }
  0x62   : > { %1459 = vmatprep.subr.bf16.mxu1 %v1458_v18 }
  0x64   : > { %394 = vmatmul.mubr.f32.vlgmr.msra.gmra.mrb[0].mxu0 %v258_v50  ;;  %454 = vmatmul.mubr.f32.vlgmr.msra.gmra.mrb[0].mxu1 %v282_v51 }
  0x65   : > { %398 = vmatprep.mubr.f32.mxu0 %v261_v52  ;;  %458 = vmatprep.mubr.f32.mxu1 %v285_v53 }
  0x66   : > { %1461 = vmatpush3.bf16.msra.mxu1 %v1458_v18 }
  0x67   : > { %1463 = vmatprep.subr.bf16.mxu1 %v1462_v21 }
  0x68   : > { %399 = vmatmul.mubr.f32.gmra.mrb[2].mxu0 %v260_v54  ;;  %459 = vmatmul.mubr.f32.gmra.mrb[2].mxu1 %v284_v55 }
  0x69   : > { %403 = vmatprep.mubr.f32.mxu0 %v263_v56  ;;  %463 = vmatprep.mubr.f32.mxu1 %v287_v57 }
  0x6a   : > { %1465 = vmatpush3.bf16.msra.mxu1 %v1462_v21 }
  0x6c   : > { %404 = vmatmul.mubr.f32.gmra.mrb[4].mxu0 %v262_v58  ;;  %464 = vmatmul.mubr.f32.gmra.mrb[4].mxu1 %v286_v59 }
  0x6d   : > { %408 = vmatprep.mubr.f32.mxu0 %v265_v60  ;;  %468 = vmatprep.mubr.f32.mxu1 %v289_v61 }
  0x70   : > { %409 = vmatmul.mubr.f32.gmra.mrb[6].mxu0 %v264_v62  ;;  %469 = vmatmul.mubr.f32.gmra.mrb[6].mxu1 %v288_v63 }
  0x71   : > { %413 = vmatprep.mubr.f32.mxu0 %v267_v0 }
  0x74   : > { %414 = vmatmul.mubr.f32.gmra.mrb[8].mxu0 %v266_v1 }
  0x75   : > { %418 = vmatprep.mubr.f32.mxu0 %v269_v2 }
  0x78   : > { %419 = vmatmul.mubr.f32.gmra.mrb[10].mxu0 %v268_v3 }
  0x79   : > { %423 = vmatprep.mubr.f32.mxu0 %v271_v4 }
  0x7c   : > { %424 = vmatmul.mubr.f32.gmra.mrb[12].mxu0 %v270_v5 }
  0x7d   : > { %428 = vmatprep.mubr.f32.mxu0 %v273_v6 }
  0x80   : > { %429 = vmatmul.mubr.f32.gmra.mrb[14].mxu0 %v272_v7 }
  0x81   : > { %433 = vmatprep.mubr.f32.mxu0 %v275_v8 }
  0x84   : > { %434 = vmatmul.mubr.f32.gmra.mrb[16].mxu0 %v274_v9 }
  0x85   : > { %438 = vmatprep.mubr.f32.mxu0 %v277_v10 }
  0x88   : > { %439 = vmatmul.mubr.f32.gmra.mrb[18].mxu0 %v276_v11 }
  0x89   : > { %443 = vmatprep.mubr.f32.mxu0 %v279_v12 }
  0x8c   : > { %444 = vmatmul.mubr.f32.gmra.mrb[20].mxu0 %v278_v13 }
  0x8d   : > { %448 = vmatprep.mubr.f32.mxu0 %v281_v14 }
  0x90   : > { %449 = vmatmul.mubr.f32.gmra.mrb[22].mxu0 %v280_v15 }
 0x137   : > { %v1326_v22 = vpop.f32.mrb[0].mxu0  ;;  %v1362_v23 = vpop.f32.mrb[0].mxu1 }
 0x138   : > { %v1327_v25 = vpop.f32.mrb[1].mxu0  ;;  %v1363_v26 = vpop.f32.mrb[1].mxu1 }
 0x139   : > { %v1328_v27 = vadd.f32 %v1327_v25, %v1326_v22  ;;  %v2115_v28 = vadd.f32 %v1363_v26, %v1362_v23 }
 0x13b   : > { %v396_v29 = vadd.f32 %v1328_v27, %v2113_v24  ;;  %v1329_v30 = vpop.f32.mrb[2].mxu0  ;;  %v1365_v31 = vpop.f32.mrb[2].mxu1 }
 0x13c   : > { %v1330_v32 = vpop.f32.mrb[3].mxu0  ;;  %v1366_v33 = vpop.f32.mrb[3].mxu1 }
 0x13d   : > { %v474_v34 = vsub.f32 0.0, %v396_v29  ;;  %v1331_v35 = vadd.f32 %v1330_v32, %v1329_v30  ;;  %v2118_v36 = vadd.f32 %v1366_v33, %v1365_v31 }
 0x13f   : > { %v490_v37 = vmul.f32 1.442695, %v474_v34  ;;  %v401_v38 = vadd.f32 %v1331_v35, %v2113_v24  ;;  %v1332_v39 = vpop.f32.mrb[4].mxu0  ;;  %v1368_v40 = vpop.f32.mrb[4].mxu1 }
 0x140   : > { %v1333_v41 = vpop.f32.mrb[5].mxu0  ;;  %v1369_v42 = vpop.f32.mrb[5].mxu1 }
 0x141   : > { %1581 = vpow2.f32 %v490_v37  ;;  %v475_v43 = vsub.f32 0.0, %v401_v38  ;;  %v1334_v44 = vadd.f32 %v1333_v41, %v1332_v39  ;;  %v2121_v45 = vadd.f32 %v1369_v42, %v1368_v40 }
 0x142   : > { %v456_v40 = vadd.f32 %v2115_v28, %v2113_v24 }
 0x143   : > { %v492_v46 = vmul.f32 1.442695, %v475_v43  ;;  %v406_v47 = vadd.f32 %v1334_v44, %v2113_v24  ;;  %v1335_v48 = vpop.f32.mrb[6].mxu0  ;;  %v1371_v49 = vpop.f32.mrb[6].mxu1  ;;  %v466_v28 = vadd.f32 %v2121_v45, %v2113_v24 }
 0x144   : > { %v1336_v50 = vpop.f32.mrb[7].mxu0  ;;  %v1372_v51 = vpop.f32.mrb[7].mxu1 }
 0x145   : > { %1583 = vpow2.f32 %v492_v46  ;;  %v476_v52 = vsub.f32 0.0, %v406_v47  ;;  %v1337_v53 = vadd.f32 %v1336_v50, %v1335_v48  ;;  %v2124_v54 = vadd.f32 %v1372_v51, %v1371_v49 }
 0x146   : > { %v461_v48 = vadd.f32 %v2118_v36, %v2113_v24  ;;  %v486_v51 = vsub.f32 0.0, %v456_v40  ;;  %v488_v45 = vsub.f32 0.0, %v466_v28 }
 0x147   : > { %v494_v55 = vmul.f32 1.442695, %v476_v52  ;;  %v411_v56 = vadd.f32 %v1337_v53, %v2113_v24  ;;  %v1338_v57 = vpop.f32.mrb[8].mxu0  ;;  %v471_v36 = vadd.f32 %v2124_v54, %v2113_v24 }
 0x148   : > { %v1339_v58 = vpop.f32.mrb[9].mxu0  ;;  %v518_v54 = vmul.f32 1.442695, %v488_v45 }
 0x149   : > { %1585 = vpow2.f32 %v494_v55  ;;  %v477_v59 = vsub.f32 0.0, %v411_v56  ;;  %v1340_v60 = vadd.f32 %v1339_v58, %v1338_v57 }
 0x14b   : > { %v1582_v61 = vpop.eup %1581  ;;  %v496_v62 = vmul.f32 1.442695, %v477_v59  ;;  %v416_v63 = vadd.f32 %v1340_v60, %v2113_v24  ;;  %v1341_v0 = vpop.f32.mrb[10].mxu0  ;;  %v487_v60 = vsub.f32 0.0, %v461_v48 }
 0x14c   : > { %v522_v1 = vadd.f32 1.0, %v1582_v61  ;;  %v1342_v2 = vpop.f32.mrb[11].mxu0 }
 0x14d   : > { %1587 = vpow2.f32 %v496_v62  ;;  %v478_v3 = vsub.f32 0.0, %v416_v63  ;;  %v1343_v4 = vadd.f32 %v1342_v2, %v1341_v0  ;;  %v514_v63 = vmul.f32 1.442695, %v486_v51 }
 0x14e   : > { %1589 = vrcp.f32 %v522_v1 }
 0x14f   : > { %v1584_v5 = vpop.eup %1583  ;;  %v498_v6 = vmul.f32 1.442695, %v478_v3  ;;  %v421_v7 = vadd.f32 %v1343_v4, %v2113_v24  ;;  %v1344_v8 = vpop.f32.mrb[12].mxu0 }
 0x150   : > { %v523_v9 = vadd.f32 1.0, %v1584_v5  ;;  %v1345_v10 = vpop.f32.mrb[13].mxu0  ;;  %v516_v5 = vmul.f32 1.442695, %v487_v60 }
 0x151   : > { %1591 = vpow2.f32 %v498_v6  ;;  %v479_v11 = vsub.f32 0.0, %v421_v7  ;;  %v1346_v12 = vadd.f32 %v1345_v10, %v1344_v8  ;;  %v489_v7 = vsub.f32 0.0, %v471_v36 }
 0x152   : > { %1593 = vrcp.f32 %v523_v9 }
 0x153   : > { %v1586_v13 = vpop.eup %1585  ;;  %v500_v14 = vmul.f32 1.442695, %v479_v11  ;;  %v426_v15 = vadd.f32 %v1346_v12, %v2113_v24  ;;  %v1347_v16 = vpop.f32.mrb[14].mxu0 }
 0x154   : > { %v524_v17 = vadd.f32 1.0, %v1586_v13  ;;  %v1348_v18 = vpop.f32.mrb[15].mxu0  ;;  %v520_v13 = vmul.f32 1.442695, %v489_v7 }
 0x155   : > { %1595 = vpow2.f32 %v500_v14  ;;  %v480_v19 = vsub.f32 0.0, %v426_v15  ;;  %v1349_v20 = vadd.f32 %v1348_v18, %v1347_v16 }
 0x156   : > { %1597 = vrcp.f32 %v524_v17 }
 0x157   : > { %v1588_v21 = vpop.eup %1587  ;;  %v502_v22 = vmul.f32 1.442695, %v480_v19  ;;  %v431_v23 = vadd.f32 %v1349_v20, %v2113_v24  ;;  %v1350_v25 = vpop.f32.mrb[16].mxu0 }
 0x158   : > { %v1590_v26 = vpop.eup %1589  ;;  %v525_v27 = vadd.f32 1.0, %v1588_v21  ;;  %v1351_v29 = vpop.f32.mrb[17].mxu0 }
 0x159   : > { %1599 = vpow2.f32 %v502_v22  ;;  %v481_v30 = vsub.f32 0.0, %v431_v23  ;;  %v1352_v31 = vadd.f32 %v1351_v29, %v1350_v25  ;;  %1402 = vmatprep.mubr.msk.f32.mxu1 %vm565_vm0, %v1590_v26 }
 0x15a   : > { %1601 = vrcp.f32 %v525_v27 }
 0x15b   : > { %v1592_v32 = vpop.eup %1591  ;;  %v504_v33 = vmul.f32 1.442695, %v481_v30  ;;  %v436_v34 = vadd.f32 %v1352_v31, %v2113_v24  ;;  %v1353_v35 = vpop.f32.mrb[18].mxu0 }
 0x15c   : > { %v1594_v37 = vpop.eup %1593  ;;  %v526_v38 = vadd.f32 1.0, %v1592_v32  ;;  %v1354_v39 = vpop.f32.mrb[19].mxu0 }
 0x15d   : > { %1603 = vpow2.f32 %v504_v33  ;;  %v482_v41 = vsub.f32 0.0, %v436_v34  ;;  %v1355_v42 = vadd.f32 %v1354_v39, %v1353_v35  ;;  %1403 = vmatmul.mubr.msk.f32.vlgmr.msra.gmra.mrb[8].mxu1 %vm565_vm0, %v1594_v37 }
 0x15e   : > { %1605 = vrcp.f32 %v526_v38 }
 0x15f   : > { %v1596_v43 = vpop.eup %1595  ;;  %v506_v44 = vmul.f32 1.442695, %v482_v41  ;;  %v441_v46 = vadd.f32 %v1355_v42, %v2113_v24  ;;  %v1356_v47 = vpop.f32.mrb[20].mxu0  ;;  %v1254_v42 = vld [vmem:[%s2464_s4] ss:$0 sm:$0xff] }
 0x160   : > { %v1598_v49 = vpop.eup %1597  ;;  %v527_v50 = vadd.f32 1.0, %v1596_v43  ;;  %v1357_v52 = vpop.f32.mrb[21].mxu0 }
 0x161   : > { %1607 = vpow2.f32 %v506_v44  ;;  %v483_v53 = vsub.f32 0.0, %v441_v46  ;;  %v1358_v55 = vadd.f32 %v1357_v52, %v1356_v47  ;;  %1405 = vmatprep.mubr.msk.f32.mxu1 %vm565_vm0, %v1598_v49 }
 0x162   : > { %1609 = vrcp.f32 %v527_v50 }
 0x163   : > { %v1600_v56 = vpop.eup %1599  ;;  %v508_v57 = vmul.f32 1.442695, %v483_v53  ;;  %v446_v58 = vadd.f32 %v1358_v55, %v2113_v24  ;;  %v1359_v59 = vpop.f32.mrb[22].mxu0 }
 0x164   : > { %v1602_v61 = vpop.eup %1601  ;;  %v528_v62 = vadd.f32 1.0, %v1600_v56  ;;  %v1360_v0 = vpop.f32.mrb[23].mxu0 }
 0x165   : > { %1611 = vpow2.f32 %v508_v57  ;;  %v484_v1 = vsub.f32 0.0, %v446_v58  ;;  %v1361_v2 = vadd.f32 %v1360_v0, %v1359_v59  ;;  %1406 = vmatmul.mubr.msk.f32.gmra.mrb[10].mxu1 %vm565_vm0, %v1602_v61 }
 0x166   : > { %1613 = vrcp.f32 %v528_v62 }
 0x167   : > { %v1604_v3 = vpop.eup %1603  ;;  %v510_v4 = vmul.f32 1.442695, %v484_v1  ;;  %v451_v6 = vadd.f32 %v1361_v2, %v2113_v24  ;;  %1615 = vpow2.f32 %v514_v63 }
 0x168   : > { %v1606_v8 = vpop.eup %1605  ;;  %v529_v9 = vadd.f32 1.0, %v1604_v3 }
 0x169   : > { %1617 = vpow2.f32 %v510_v4  ;;  %v485_v10 = vsub.f32 0.0, %v451_v6  ;;  %1408 = vmatprep.mubr.msk.f32.mxu1 %vm565_vm0, %v1606_v8 }
 0x16a   : > { %1619 = vrcp.f32 %v529_v9 }
 0x16b   : > { %v1608_v11 = vpop.eup %1607  ;;  %1621 = vpow2.f32 %v516_v5  ;;  %v512_v12 = vmul.f32 1.442695, %v485_v10 }
 0x16c   : > { %v1610_v14 = vpop.eup %1609  ;;  %v530_v15 = vadd.f32 1.0, %v1608_v11  ;;  %1623 = vpow2.f32 %v518_v54 }
 0x16d   : > { %1625 = vpow2.f32 %v512_v12  ;;  %1409 = vmatmul.mubr.msk.f32.gmra.mrb[12].mxu1 %vm565_vm0, %v1610_v14 }
 0x16e   : > { %1627 = vrcp.f32 %v530_v15 }
 0x16f   : > { %v1612_v24 = vpop.eup %1611  ;;  %1629 = vpow2.f32 %v520_v13 }
 0x170   : > { %v1614_v16 = vpop.eup %1613  ;;  %v531_v17 = vadd.f32 1.0, %v1612_v24 }
 0x171   : > { %1411 = vmatprep.mubr.msk.f32.mxu1 %vm565_vm0, %v1614_v16  ;;  %v1616_v18 = vpop.eup %1615 }
 0x172   : > { %1631 = vrcp.f32 %v531_v17  ;;  %v534_v26 = vadd.f32 1.0, %v1616_v18 }
 0x173   : > { %v1618_v19 = vpop.eup %1617 }
 0x174   : > { %v1620_v20 = vpop.eup %1619  ;;  %v532_v21 = vadd.f32 1.0, %v1618_v19 }
 0x175   : > { %v1622_v22 = vpop.eup %1621  ;;  %1412 = vmatmul.mubr.msk.f32.gmra.mrb[14].mxu1 %vm565_vm0, %v1620_v20 }
 0x176   : > { %v1624_v23 = vpop.eup %1623  ;;  %1633 = vrcp.f32 %v532_v21  ;;  %v535_v31 = vadd.f32 1.0, %v1622_v22 }
 0x177   : > { %v1626_v25 = vpop.eup %1625  ;;  %v536_v32 = vadd.f32 1.0, %v1624_v23 }
 0x178   : > { %v1628_v27 = vpop.eup %1627  ;;  %v533_v29 = vadd.f32 1.0, %v1626_v25 }
 0x179   : > { %v1630_v30 = vpop.eup %1629  ;;  %1414 = vmatprep.mubr.msk.f32.mxu1 %vm565_vm0, %v1628_v27 }
 0x17a   : > { %1635 = vrcp.f32 %v533_v29  ;;  %v537_v34 = vadd.f32 1.0, %v1630_v30 }
 0x17b   : > { %1637 = vrcp.f32 %v534_v26 }
 0x17c   : > { %v1632_v33 = vpop.eup %1631  ;;  %1639 = vrcp.f32 %v535_v31 }
 0x17d   : > { %1415 = vmatmul.mubr.msk.f32.gmra.mrb[16].mxu1 %vm565_vm0, %v1632_v33  ;;  %1641 = vrcp.f32 %v536_v32 }
 0x17e   : > { %1643 = vrcp.f32 %v537_v34 }
 0x180   : > { %v1634_v35 = vpop.eup %1633 }
 0x181   : > { %1417 = vmatprep.mubr.msk.f32.mxu1 %vm565_vm0, %v1634_v35 }
 0x184   : > { %v1636_v37 = vpop.eup %1635 }
 0x185   : > { %v1638_v38 = vpop.eup %1637  ;;  %1418 = vmatmul.mubr.msk.f32.gmra.mrb[18].mxu1 %vm565_vm0, %v1636_v37 }
 0x186   : > { %1420 = vmatprep.mubr.msk.f32.mxu1 %vm565_vm0, %v1638_v38  ;;  %v1640_v39 = vpop.eup %1639 }
 0x187   : > { %v1642_v40 = vpop.eup %1641 }
 0x188   : > { %v1644_v41 = vpop.eup %1643 }
 0x189   : > { %1421 = vmatmul.mubr.msk.f32.gmra.mrb[20].mxu1 %vm565_vm0, %v1640_v39 }
 0x18a   : > { %1423 = vmatprep.mubr.msk.f32.mxu1 %vm565_vm0, %v1642_v40 }
 0x18d   : > { %1424 = vmatmul.mubr.msk.f32.gmra.mrb[22].mxu1 %vm565_vm0, %v1644_v41 }
 0x230   : > { %v1404_v43 = vpop.f32.mrb[8].mxu1 }
 0x231   : > { %v2162_v44 = vadd.f32 %v1404_v43, %v1254_v42  ;;  %v680_v46 = vpop.f32.mrb[9].mxu1 }
 0x232   : > { %v2164_v47 = vadd.f32 %v1254_v42, %v680_v46 }
 0x233   : > { %v763_v48 = vsel %vm759_vm1, %v2162_v44, -inf }
 0x234   : > { %764 = vmax.xlane.f32.xlu0 %v763_v48  ;;  %v760_v49 = vsel %vm759_vm1, %v2164_v47, -inf }
 0x238   : > { %v1407_v50 = vpop.f32.mrb[10].mxu1  ;;  %761 = vmax.xlane.f32.xlu0 %v760_v49 }
 0x239   : > { %v2170_v51 = vadd.f32 %v1407_v50, %v1254_v42  ;;  %v690_v52 = vpop.f32.mrb[11].mxu1 }
 0x23a   : > { %v2172_v28 = vadd.f32 %v1254_v42, %v690_v52 }
 0x23b   : > { %v769_v53 = vsel %vm759_vm1, %v2170_v51, -inf }
 0x23c   : > { %770 = vmax.xlane.f32.xlu1 %v769_v53  ;;  %v766_v55 = vsel %vm759_vm1, %v2172_v28, -inf }
 0x240   : > { %v1410_v56 = vpop.f32.mrb[12].mxu1  ;;  %767 = vmax.xlane.f32.xlu1 %v766_v55 }
 0x241   : > { %v2178_v57 = vadd.f32 %v1410_v56, %v1254_v42  ;;  %v700_v58 = vpop.f32.mrb[13].mxu1 }
 0x242   : > { %v2180_v59 = vadd.f32 %v1254_v42, %v700_v58 }
 0x243   : > { %v775_v60 = vsel %vm759_vm1, %v2178_v57, -inf }
 0x244   : > { %776 = vmax.xlane.f32.xlu1 %v775_v60  ;;  %v772_v36 = vsel %vm759_vm1, %v2180_v59, -inf }
 0x245   : > { %773 = vmax.xlane.f32.xlu0 %v772_v36 }
 0x248   : > { %v1413_v61 = vpop.f32.mrb[14].mxu1 }
 0x249   : > { %v2186_v62 = vadd.f32 %v1413_v61, %v1254_v42  ;;  %v710_v63 = vpop.f32.mrb[15].mxu1 }
 0x24a   : > { %v2188_v0 = vadd.f32 %v1254_v42, %v710_v63 }
 0x24b   : > { %v781_v45 = vsel %vm759_vm1, %v2186_v62, -inf }
 0x24c   : > { %782 = vmax.xlane.f32.xlu1 %v781_v45  ;;  %v778_v1 = vsel %vm759_vm1, %v2188_v0, -inf }
 0x24d   : > { %779 = vmax.xlane.f32.xlu0 %v778_v1 }
 0x250   : > { %v1416_v2 = vpop.f32.mrb[16].mxu1 }
 0x251   : > { %v2194_v3 = vadd.f32 %v1416_v2, %v1254_v42  ;;  %v720_v4 = vpop.f32.mrb[17].mxu1 }
 0x252   : > { %v2196_v5 = vadd.f32 %v1254_v42, %v720_v4 }
 0x253   : > { %v787_v6 = vsel %vm759_vm1, %v2194_v3, -inf }
 0x254   : > { %788 = vmax.xlane.f32.xlu1 %v787_v6  ;;  %v784_v7 = vsel %vm759_vm1, %v2196_v5, -inf }
 0x255   : > { %785 = vmax.xlane.f32.xlu0 %v784_v7 }
 0x258   : > { %v1419_v8 = vpop.f32.mrb[18].mxu1 }
 0x259   : > { %v2202_v9 = vadd.f32 %v1419_v8, %v1254_v42  ;;  %v730_v54 = vpop.f32.mrb[19].mxu1 }
 0x25a   : > { %v2204_v10 = vadd.f32 %v1254_v42, %v730_v54 }
 0x25b   : > { %v793_v11 = vsel %vm759_vm1, %v2202_v9, -inf }
 0x25c   : > { %v1422_v12 = vpop.f32.mrb[20].mxu1  ;;  %794 = vmax.xlane.f32.xlu1 %v793_v11  ;;  %v790_v13 = vsel %vm759_vm1, %v2204_v10, -inf }
 0x25d   : > { %v2210_v14 = vadd.f32 %v1422_v12, %v1254_v42  ;;  %v740_v15 = vpop.f32.mrb[21].mxu1  ;;  %791 = vmax.xlane.f32.xlu0 %v790_v13 }
 0x25e   : > { %v2212_v24 = vadd.f32 %v1254_v42, %v740_v15 }
 0x25f   : > { %v799_v16 = vsel %vm759_vm1, %v2210_v14, -inf }
 0x260   : > { %v1425_v17 = vpop.f32.mrb[22].mxu1  ;;  %800 = vmax.xlane.f32.xlu1 %v799_v16  ;;  %v796_v18 = vsel %vm759_vm1, %v2212_v24, -inf }
 0x261   : > { %v2218_v19 = vadd.f32 %v1425_v17, %v1254_v42  ;;  %v750_v20 = vpop.f32.mrb[23].mxu1  ;;  %797 = vmax.xlane.f32.xlu0 %v796_v18 }
 0x262   : > { %v2220_v21 = vadd.f32 %v1254_v42, %v750_v20 }
 0x263   : > { %v805_v22 = vsel %vm759_vm1, %v2218_v19, -inf }
 0x264   : > { %806 = vmax.xlane.f32.xlu1 %v805_v22  ;;  %v802_v23 = vsel %vm759_vm1, %v2220_v21, -inf }
 0x265   : > { %803 = vmax.xlane.f32.xlu0 %v802_v23 }
 0x2c1   : > { %v765_v25 = vpop.xlane.xlu0 %764 }
 0x2c2   : > { %v809_v26 = vsub.f32 %v2162_v44, %v765_v25 }
 0x2c4   : > { %v826_v27 = vmul.f32 1.442695, %v809_v26 }
 0x2c5   : > { %v762_v29 = vpop.xlane.xlu0 %761 }
 0x2c6   : > { %1645 = vpow2.f32 %v826_v27  ;;  %v808_v30 = vsub.f32 %v2164_v47, %v762_v29 }
 0x2c8   : > { %v824_v31 = vmul.f32 1.442695, %v808_v30 }
 0x2c9   : > { %v771_v32 = vpop.xlane.xlu1 %770 }
 0x2ca   : > { %1647 = vpow2.f32 %v824_v31  ;;  %v811_v33 = vsub.f32 %v2170_v51, %v771_v32 }
 0x2cc   : > { %v830_v34 = vmul.f32 1.442695, %v811_v33 }
 0x2cd   : > { %v768_v35 = vpop.xlane.xlu1 %767 }
 0x2ce   : > { %1649 = vpow2.f32 %v830_v34  ;;  %v810_v37 = vsub.f32 %v2172_v28, %v768_v35 }
 0x2d0   : > { %v2230_v38 = vpop.eup %1645  ;;  %v828_v39 = vmul.f32 1.442695, %v810_v37 }
 0x2d1   : > { %v777_v40 = vpop.xlane.xlu1 %776  ;;  %v859_v41 = vsel %vm759_vm1, %v2230_v38, 0.0 }
 0x2d2   : > { %1651 = vpow2.f32 %v828_v39  ;;  %v813_v42 = vsub.f32 %v2178_v57, %v777_v40  ;;  %860 = vadd.xlane.f32.xlu1 %v859_v41  ;;  %v774_v43 = vpop.xlane.xlu0 %773 }
 0x2d3   : > { %v812_v44 = vsub.f32 %v2180_v59, %v774_v43 }
 0x2d4   : > { %v2236_v46 = vpop.eup %1647  ;;  %v834_v47 = vmul.f32 1.442695, %v813_v42 }
 0x2d5   : > { %v832_v48 = vmul.f32 1.442695, %v812_v44  ;;  %v856_v49 = vsel %vm759_vm1, %v2236_v46, 0.0 }
 0x2d6   : > { %1653 = vpow2.f32 %v834_v47  ;;  %857 = vadd.xlane.f32.xlu0 %v856_v49 }
 0x2d7   : > { %1655 = vpow2.f32 %v832_v48 }
 0x2d8   : > { %v2240_v50 = vpop.eup %1649 }
 0x2d9   : > { %v783_v51 = vpop.xlane.xlu1 %782  ;;  %v865_v52 = vsel %vm759_vm1, %v2240_v50, 0.0 }
 0x2da   : > { %v815_v28 = vsub.f32 %v2186_v62, %v783_v51  ;;  %866 = vadd.xlane.f32.xlu1 %v865_v52  ;;  %v780_v53 = vpop.xlane.xlu0 %779 }
 0x2db   : > { %v814_v55 = vsub.f32 %v2188_v0, %v780_v53 }
 0x2dc   : > { %v2246_v56 = vpop.eup %1651  ;;  %v838_v57 = vmul.f32 1.442695, %v815_v28 }
 0x2dd   : > { %v836_v58 = vmul.f32 1.442695, %v814_v55  ;;  %v862_v59 = vsel %vm759_vm1, %v2246_v56, 0.0 }
 0x2de   : > { %1657 = vpow2.f32 %v838_v57  ;;  %863 = vadd.xlane.f32.xlu0 %v862_v59 }
 0x2df   : > { %1659 = vpow2.f32 %v836_v58 }
 0x2e0   : > { %v2250_v60 = vpop.eup %1653 }
 0x2e1   : > { %v2252_v36 = vpop.eup %1655  ;;  %v789_v61 = vpop.xlane.xlu1 %788  ;;  %v871_v62 = vsel %vm759_vm1, %v2250_v60, 0.0 }
 0x2e2   : > { %v817_v63 = vsub.f32 %v2194_v3, %v789_v61  ;;  %872 = vadd.xlane.f32.xlu1 %v871_v62  ;;  %v786_v0 = vpop.xlane.xlu0 %785  ;;  %v868_v45 = vsel %vm759_vm1, %v2252_v36, 0.0 }
 0x2e3   : > { %v816_v1 = vsub.f32 %v2196_v5, %v786_v0  ;;  %869 = vadd.xlane.f32.xlu0 %v868_v45 }
 0x2e4   : > { %v842_v2 = vmul.f32 1.442695, %v817_v63 }
 0x2e5   : > { %v840_v4 = vmul.f32 1.442695, %v816_v1 }
 0x2e6   : > { %1661 = vpow2.f32 %v842_v2 }
 0x2e7   : > { %1663 = vpow2.f32 %v840_v4 }
 0x2e8   : > { %v2260_v6 = vpop.eup %1657 }
 0x2e9   : > { %v2262_v7 = vpop.eup %1659  ;;  %v795_v8 = vpop.xlane.xlu1 %794  ;;  %v877_v3 = vsel %vm759_vm1, %v2260_v6, 0.0 }
 0x2ea   : > { %v819_v54 = vsub.f32 %v2202_v9, %v795_v8  ;;  %878 = vadd.xlane.f32.xlu1 %v877_v3  ;;  %v792_v11 = vpop.xlane.xlu0 %791  ;;  %v874_v5 = vsel %vm759_vm1, %v2262_v7, 0.0 }
 0x2eb   : > { %v818_v12 = vsub.f32 %v2204_v10, %v792_v11  ;;  %875 = vadd.xlane.f32.xlu0 %v874_v5 }
 0x2ec   : > { %v846_v13 = vmul.f32 1.442695, %v819_v54 }
 0x2ed   : > { %v844_v15 = vmul.f32 1.442695, %v818_v12  ;;  %v801_v16 = vpop.xlane.xlu1 %800 }
 0x2ee   : > { %1665 = vpow2.f32 %v846_v13  ;;  %v821_v17 = vsub.f32 %v2210_v14, %v801_v16  ;;  %v798_v18 = vpop.xlane.xlu0 %797 }
 0x2ef   : > { %1667 = vpow2.f32 %v844_v15  ;;  %v820_v20 = vsub.f32 %v2212_v24, %v798_v18 }
 0x2f0   : > { %v2272_v22 = vpop.eup %1661  ;;  %v850_v9 = vmul.f32 1.442695, %v821_v17 }
 0x2f1   : > { %v2274_v23 = vpop.eup %1663  ;;  %v848_v25 = vmul.f32 1.442695, %v820_v20  ;;  %v807_v26 = vpop.xlane.xlu1 %806  ;;  %v883_v10 = vsel %vm759_vm1, %v2272_v22, 0.0 }
 0x2f2   : > { %1669 = vpow2.f32 %v850_v9  ;;  %v823_v27 = vsub.f32 %v2218_v19, %v807_v26  ;;  %884 = vadd.xlane.f32.xlu1 %v883_v10  ;;  %v804_v29 = vpop.xlane.xlu0 %803  ;;  %v880_v14 = vsel %vm759_vm1, %v2274_v23, 0.0 }
 0x2f3   : > { %1671 = vpow2.f32 %v848_v25  ;;  %v822_v24 = vsub.f32 %v2220_v21, %v804_v29  ;;  %881 = vadd.xlane.f32.xlu0 %v880_v14 }
 0x2f4   : > { %v854_v30 = vmul.f32 1.442695, %v823_v27 }
 0x2f5   : > { %v852_v31 = vmul.f32 1.442695, %v822_v24 }
 0x2f6   : > { %1673 = vpow2.f32 %v854_v30 }
 0x2f7   : > { %1675 = vpow2.f32 %v852_v31 }
 0x2f8   : > { %v2282_v32 = vpop.eup %1665 }
 0x2f9   : > { %v2284_v33 = vpop.eup %1667  ;;  %v889_v19 = vsel %vm759_vm1, %v2282_v32, 0.0 }
 0x2fa   : > { %890 = vadd.xlane.f32.xlu1 %v889_v19  ;;  %v886_v34 = vsel %vm759_vm1, %v2284_v33, 0.0 }
 0x2fb   : > { %887 = vadd.xlane.f32.xlu0 %v886_v34 }
 0x2fc   : > { %v2290_v35 = vpop.eup %1669 }
 0x2fd   : > { %v2292_v21 = vpop.eup %1671  ;;  %v895_v37 = vsel %vm759_vm1, %v2290_v35, 0.0 }
 0x2fe   : > { %896 = vadd.xlane.f32.xlu1 %v895_v37  ;;  %v892_v39 = vsel %vm759_vm1, %v2292_v21, 0.0 }
 0x2ff   : > { %893 = vadd.xlane.f32.xlu0 %v892_v39 }
 0x300   : > { %v2298_v40 = vpop.eup %1673 }
 0x301   : > { %v2300_v41 = vpop.eup %1675  ;;  %v901_v42 = vsel %vm759_vm1, %v2298_v40, 0.0 }
 0x302   : > { %902 = vadd.xlane.f32.xlu1 %v901_v42  ;;  %v898_v43 = vsel %vm759_vm1, %v2300_v41, 0.0 }
 0x303   : > { %899 = vadd.xlane.f32.xlu0 %v898_v43 }
 0x35f   : > { %v861_v44 = vpop.xlane.xlu1 %860 }
 0x360   : > { %1677 = vrcp.f32 %v861_v44 }
 0x363   : > { %v858_v47 = vpop.xlane.xlu0 %857 }
 0x364   : > { %1679 = vrcp.f32 %v858_v47 }
 0x367   : > { %v867_v48 = vpop.xlane.xlu1 %866 }
 0x368   : > { %1681 = vrcp.f32 %v867_v48 }
 0x36a   : > { %v1678_v49 = vpop.eup %1677 }
 0x36b   : > { %v907_v51 = vmul.f32 %v1678_v49, %v2230_v38  ;;  %v864_v52 = vpop.xlane.xlu0 %863 }
 0x36c   : > { %1683 = vrcp.f32 %v864_v52 }
 0x36d   : > { %937 = vst.msk [vmem:[%s2308_s6 + $0x8] sm:$0xff] %vm759_vm1, %v907_v51 }
 0x36e   : > { %v1680_v28 = vpop.eup %1679 }
 0x36f   : > { %v905_v53 = vmul.f32 %v1680_v28, %v2236_v46  ;;  %v873_v55 = vpop.xlane.xlu1 %872 }
 0x370   : > { %1685 = vrcp.f32 %v873_v55  ;;  %v870_v57 = vpop.xlane.xlu0 %869 }
 0x371   : > { %936 = vst.msk [vmem:[%s2308_s6] sm:$0xff] %vm759_vm1, %v905_v53  ;;  %1687 = vrcp.f32 %v870_v57 }
 0x372   : > { %v1682_v38 = vpop.eup %1681 }
 0x373   : > { %v911_v58 = vmul.f32 %v1682_v38, %v2240_v50 }
 0x375   : > { %939 = vst.msk [vmem:[%s2308_s6 + $0x18] sm:$0xff] %vm759_vm1, %v911_v58 }
 0x376   : > { %v1684_v59 = vpop.eup %1683 }
 0x377   : > { %v909_v61 = vmul.f32 %v1684_v59, %v2246_v56  ;;  %v879_v62 = vpop.xlane.xlu1 %878 }
 0x378   : > { %1689 = vrcp.f32 %v879_v62  ;;  %v876_v63 = vpop.xlane.xlu0 %875 }
 0x379   : > { %938 = vst.msk [vmem:[%s2308_s6 + $0x10] sm:$0xff] %vm759_vm1, %v909_v61  ;;  %1691 = vrcp.f32 %v876_v63 }
 0x37a   : > { %v1686_v46 = vpop.eup %1685 }
 0x37b   : > { %v1688_v0 = vpop.eup %1687  ;;  %v915_v45 = vmul.f32 %v1686_v46, %v2250_v60 }
 0x37c   : > { %v913_v1 = vmul.f32 %v1688_v0, %v2252_v36 }
 0x37d   : > { %941 = vst.msk [vmem:[%s2308_s6 + $0x28] sm:$0xff] %vm759_vm1, %v915_v45 }
 0x37e   : > { %940 = vst.msk [vmem:[%s2308_s6 + $0x20] sm:$0xff] %vm759_vm1, %v913_v1 }
 0x37f   : > { %v885_v50 = vpop.xlane.xlu1 %884 }
 0x380   : > { %1693 = vrcp.f32 %v885_v50  ;;  %v882_v56 = vpop.xlane.xlu0 %881 }
 0x381   : > { %1695 = vrcp.f32 %v882_v56 }
 0x382   : > { %v1690_v2 = vpop.eup %1689 }
 0x383   : > { %v1692_v4 = vpop.eup %1691  ;;  %v919_v8 = vmul.f32 %v1690_v2, %v2260_v6 }
 0x384   : > { %v917_v3 = vmul.f32 %v1692_v4, %v2262_v7 }
 0x385   : > { %943 = vst.msk [vmem:[%s2308_s6 + $0x38] sm:$0xff] %vm759_vm1, %v919_v8 }
 0x386   : > { %942 = vst.msk [vmem:[%s2308_s6 + $0x30] sm:$0xff] %vm759_vm1, %v917_v3 }
 0x387   : > { %v891_v60 = vpop.xlane.xlu1 %890 }
 0x388   : > { %1697 = vrcp.f32 %v891_v60  ;;  %v888_v36 = vpop.xlane.xlu0 %887 }
 0x389   : > { %1699 = vrcp.f32 %v888_v36 }
 0x38a   : > { %v1694_v54 = vpop.eup %1693 }
 0x38b   : > { %v1696_v11 = vpop.eup %1695  ;;  %v923_v5 = vmul.f32 %v1694_v54, %v2272_v22  ;;  %v897_v12 = vpop.xlane.xlu1 %896 }
 0x38c   : > { %v921_v13 = vmul.f32 %v1696_v11, %v2274_v23  ;;  %1701 = vrcp.f32 %v897_v12  ;;  %v894_v6 = vpop.xlane.xlu0 %893 }
 0x38d   : > { %945 = vst.msk [vmem:[%s2308_s6 + $0x48] sm:$0xff] %vm759_vm1, %v923_v5  ;;  %1703 = vrcp.f32 %v894_v6 }
 0x38e   : > { %944 = vst.msk [vmem:[%s2308_s6 + $0x40] sm:$0xff] %vm759_vm1, %v921_v13 }
 0x38f   : > { %v903_v7 = vpop.xlane.xlu1 %902 }
 0x390   : > { %1705 = vrcp.f32 %v903_v7  ;;  %v900_v15 = vpop.xlane.xlu0 %899 }
 0x391   : > { %1707 = vrcp.f32 %v900_v15 }
 0x392   : > { %v1698_v16 = vpop.eup %1697 }
 0x393   : > { %v1700_v17 = vpop.eup %1699  ;;  %v927_v18 = vmul.f32 %v1698_v16, %v2282_v32 }
 0x394   : > { %v925_v20 = vmul.f32 %v1700_v17, %v2284_v33 }
 0x395   : > { %947 = vst.msk [vmem:[%s2308_s6 + $0x58] sm:$0xff] %vm759_vm1, %v927_v18 }
 0x396   : > { %v1702_v22 = vpop.eup %1701  ;;  %946 = vst.msk [vmem:[%s2308_s6 + $0x50] sm:$0xff] %vm759_vm1, %v925_v20 }
 0x397   : > { %v1704_v9 = vpop.eup %1703  ;;  %v931_v23 = vmul.f32 %v1702_v22, %v2290_v35 }
 0x398   : > { %v929_v25 = vmul.f32 %v1704_v9, %v2292_v21  ;;  %958 = sbr.rel (!%p1910_p8) target bundleno = 976 (0x3d0), region = 48 }
 0x399   : > { %949 = vst.msk [vmem:[%s2308_s6 + $0x68] sm:$0xff] %vm759_vm1, %v931_v23 }
 0x39a   : > { %v1706_v26 = vpop.eup %1705  ;;  %948 = vst.msk [vmem:[%s2308_s6 + $0x60] sm:$0xff] %vm759_vm1, %v929_v25 }
 0x39b   : > { %v1708_v10 = vpop.eup %1707  ;;  %v935_v27 = vmul.f32 %v1706_v26, %v2298_v40 }
 0x39c   : > { %v933_v29 = vmul.f32 %v1708_v10, %v2300_v41 }
 0x39d   : > { %951 = vst.msk [vmem:[%s2308_s6 + $0x78] sm:$0xff] %vm759_vm1, %v935_v27 }
 0x39e   : > { %950 = vst.msk [vmem:[%s2308_s6 + $0x70] sm:$0xff] %vm759_vm1, %v933_v29 }
 0x39f   : > { %s2478_s7 = smov (!%p961_p7, %s960_s7), 16 }
 0x3a0   : > { %s1273_s13 = sshll.u32 %s2478_s7, 7 }
 0x3a1   : > { %p1276_p11 = scmp.eq.s32.totalorder %s1273_s13, 0 }
 0x3a2   : > { %s2370_s28 = sshrl.u32 (!%p1276_p11), %s2478_s7, 4 }
 0x3a3   : > { %969 = sbr.rel (%p1276_p11) target bundleno = 976 (0x3d0), region = 52  ;;  %p1277_p8 = scmp.le.s32.totalorder (!%p1276_p11), %s2370_s28, 0 }
 0x3aa   : > { %1191 = sbr.rel (%p1277_p8) target bundleno = 955 (0x3bb), region = 134  ;;  %s2468_s22 = smov (!%p1277_p8), %s2364_s12 }
 0x3ab   : > { %s2469_s17 = smov (!%p1277_p8), %s2308_s6  ;;  %s2379_s18 = smov (!%p1277_p8), 0  }
 0x3ac   : > { %s2381_s8 = smov (!%p1277_p8), 0  }
 0x3b1 LB: >> { %v1061_v14 = vld [vmem:[%s1811_s17] sm:$0xff]  ;;  %v1063_v24 = vld [vmem:[%s1811_s17 + $0x8] sm:$0xff]  ;;  %v1065_v30 = vld [vmem:[%s1811_s17 + $0x10] sm:$0xff]  ;;  %s1093_s10 = sadd.s32 1, %s1815_s18  ;;  %s1055_s8 = sadd.s32 1, %s1819_s8   ;;  %s1819_s8 = sphi %s2381_s8, %s1055_s8   ;;  %s1815_s18 = sphi %s2379_s18, %s2470_s18   ;;  %s1811_s17 = sphi %s2469_s17, %s1098_s17   ;;  %s1807_s22 = sphi %s2468_s22, %s1099_s22  }
 0x3b2   : >> { %1062 = vst [vmem:[%s1807_s22] sm:$0xff] %v1061_v14  ;;  %1064 = vst [vmem:[%s1807_s22 + $0x8] sm:$0xff] %v1063_v24  ;;  %v1067_v31 = vld [vmem:[%s1811_s17 + $0x18] sm:$0xff]  ;;  %v1069_v32 = vld [vmem:[%s1811_s17 + $0x20] sm:$0xff]  ;;  %p1094_p6 = scmp.ge.s32.totalorder %s1093_s10, %s2370_s28  ;;  %p1054_p9 = scmp.ge.s32.totalorder %s1055_s8, %s2370_s28 }
 0x3b3   : >> { %1066 = vst [vmem:[%s1807_s22 + $0x10] sm:$0xff] %v1065_v30  ;;  %v1071_v33 = vld [vmem:[%s1811_s17 + $0x28] sm:$0xff]  ;;  %1068 = vst [vmem:[%s1807_s22 + $0x18] sm:$0xff] %v1067_v31  ;;  %v1073_v19 = vld [vmem:[%s1811_s17 + $0x30] sm:$0xff] }
 0x3b4   : >> { %1070 = vst [vmem:[%s1807_s22 + $0x20] sm:$0xff] %v1069_v32  ;;  %1072 = vst [vmem:[%s1807_s22 + $0x28] sm:$0xff] %v1071_v33  ;;  %v1075_v34 = vld [vmem:[%s1811_s17 + $0x38] sm:$0xff]  ;;  %v1077_v35 = vld [vmem:[%s1811_s17 + $0x40] sm:$0xff]  ;;  %s2480_s10 = smov (%p1094_p6, %s1093_s10), 0  ;;  %1057 = sbr.rel (!%p1054_p9) target bundleno = 945 (0x3b1), region = 140 }
 0x3b5   : >> { %1074 = vst [vmem:[%s1807_s22 + $0x30] sm:$0xff] %v1073_v19  ;;  %1076 = vst [vmem:[%s1807_s22 + $0x38] sm:$0xff] %v1075_v34  ;;  %v1079_v21 = vld [vmem:[%s1811_s17 + $0x48] sm:$0xff]  ;;  %v1081_v37 = vld [vmem:[%s1811_s17 + $0x50] sm:$0xff]  ;;  %s1278_s21 = sshll.u32 %s2480_s10, 7  ;;  %s2470_s18 = smov %s2480_s10 }
 0x3b6   : >> { %1078 = vst [vmem:[%s1807_s22 + $0x40] sm:$0xff] %v1077_v35  ;;  %v1083_v39 = vld [vmem:[%s1811_s17 + $0x58] sm:$0xff]  ;;  %1080 = vst [vmem:[%s1807_s22 + $0x48] sm:$0xff] %v1079_v21  ;;  %v1085_v40 = vld [vmem:[%s1811_s17 + $0x60] sm:$0xff] }
 0x3b7   : >> { %1082 = vst [vmem:[%s1807_s22 + $0x50] sm:$0xff] %v1081_v37  ;;  %1084 = vst [vmem:[%s1807_s22 + $0x58] sm:$0xff] %v1083_v39  ;;  %v1087_v41 = vld [vmem:[%s1811_s17 + $0x68] sm:$0xff]  ;;  %v1089_v42 = vld [vmem:[%s1811_s17 + $0x70] sm:$0xff] }
 0x3b8   : >> { %1086 = vst [vmem:[%s1807_s22 + $0x60] sm:$0xff] %v1085_v40  ;;  %1088 = vst [vmem:[%s1807_s22 + $0x68] sm:$0xff] %v1087_v41  ;;  %v1091_v43 = vld [vmem:[%s1811_s17 + $0x78] sm:$0xff]  ;;  %s1098_s17 = scalar_lea.vmem %s2308_s6, %s1278_s21 [#allocation4]  }
 0x3b9   : >> { %1090 = vst [vmem:[%s1807_s22 + $0x70] sm:$0xff] %v1089_v42  ;;  %1092 = vst [vmem:[%s1807_s22 + $0x78] sm:$0xff] %v1091_v43  ;;  %s1099_s22 = scalar_lea.vmem %s2364_s12, %s1278_s21  }
 0x3bb PF: > { %s2439_s15 = sand.u32 15, %s2478_s7   ;;  %s1292_s24 = sshll.u32 %s2370_s28, 7 }
 0x3bc   : > { %s1104_s16 = scalar_lea.vmem %s2308_s6, %s1292_s24 [#allocation4]   ;;  %s1106_s25 = scalar_lea.vmem %s2364_s12, %s1292_s24  }
 0x3bd   : > { %p1283_p10 = scmp.le.s32.totalorder %s2439_s15, 0 }
 0x3be   : > { %s1821_s29 = smov (!%p1283_p10), %s1106_s25   ;;  %s1825_s30 = smov (!%p1283_p10), %s1104_s16  }
 0x3bf   : > { %1205 = sbr.rel (%p1283_p10) target bundleno = 976 (0x3d0), region = 145  ;;  %s1829_s14 = smov (!%p1283_p10), 0  }
 0x3c0   : > { %s1833_s27 = smov (!%p1283_p10), 0  }
 0x3c6 LB: >> { %v1116_v44 = vld [vmem:[%s1827_s30] sm:$0xff]  ;;  %s1118_s7 = sadd.s32 1, %s1831_s14  ;;  %s1110_s27 = sadd.s32 1, %s1835_s27   ;;  %s1835_s27 = sphi %s1833_s27, %s1110_s27   ;;  %s1831_s14 = sphi %s1829_s14, %s1830_s14   ;;  %s1827_s30 = sphi %s1825_s30, %s1123_s30   ;;  %s1823_s29 = sphi %s1821_s29, %s1124_s29  }
 0x3c7   : >> { %1117 = vst [vmem:[%s1823_s29] sm:$0xff] %v1116_v44  ;;  %p1119_p12 = scmp.ge.s32.totalorder %s1118_s7, %s2439_s15  ;;  %p1109_p13 = scmp.ge.s32.totalorder %s1110_s27, %s2439_s15 }
 0x3c9   : >> { %s2482_s7 = smov (%p1119_p12, %s1118_s7), 0  ;;  %1112 = sbr.rel (!%p1109_p13) target bundleno = 966 (0x3c6), region = 151 }
 0x3ca   : >> { %s1284_s6 = sshll.u32 %s2482_s7, 3  ;;  %s1830_s14 = smov %s2482_s7  }
 0x3cb   : >> { %s1123_s30 = scalar_lea.vmem %s1104_s16, %s1284_s6 [#allocation4]   ;;  %s1124_s29 = scalar_lea.vmem %s1106_s25, %s1284_s6  }
 0x3d0 PF: > { %p15_p1 = scmp.ge.s32.totalorder %s1892_s23, 5   ;;  %s2471_s18 = smov %s1795_s19 }
 0x3d1   : > { %s2472_s19 = smov %s1799_s20  ;;  %s2473_s20 = smov %s1902_s26 }
 0x3d2   : > { %s2474_s21 = smov %s1892_s23  ;;  %17 = sbr.rel (!%p15_p1) target bundleno = 3 (0x3), region = 162 }
 0x3d9   :  { %1140 = vsyncpa [#allocation3], 1 }
 0x3da   :  { %1142 = vsyncpa [#allocation3 + $0x1], 1 }

</bundles_post_ra>
